<compile_context>
chip_gen: v7x
topology: tpu7x:2x2x1
jax: 0.10.0
libtpu: 0.0.40
codegen_flags: <defaults>
</compile_context>

<pallas_src>
import functools

import jax
import jax.numpy as jnp
from jax.experimental import pallas as pl
from jax.experimental.pallas import tpu as pltpu


def _softplus(x):
    # Stable softplus: log1p(exp(x)) without overflow for large x.
    return jnp.maximum(x, 0.0) + jnp.log1p(jnp.exp(-jnp.abs(x)))


def _bbb_conv_kernel(wm_ref, wr_ref, we_ref, bm_ref, br_ref, be_ref, x_ref,
                     out_ref, w_sc, b_sc, *, KH, KW, stride, dilation):
    """Fused reparameterize + direct conv2d (NHWC, one batch element per step).

    wm/wr/we : (K, TN)   mu / rho / eps, HWIO-flattened (K = KH*KW*C)
    bm/br/be : (1, TN)
    x_ref    : (1, HP, WP, C)   padded NHWC input
    out_ref  : (1, OH, OW, TN)
    w_sc     : (K, TN) VMEM scratch (sampled weight),  b_sc: (1, TN) (sampled bias)
    """
    # Sample weight/bias once per out-channel tile (first batch step), keep them
    # resident in VMEM for every batch element of this tile.
    @pl.when(pl.program_id(1) == 0)
    def _():
        w_sc[...] = wm_ref[...] + we_ref[...] * _softplus(wr_ref[...])
        b_sc[...] = bm_ref[...] + be_ref[...] * _softplus(br_ref[...])

    _, OH, OW, TN = out_ref.shape
    C = x_ref.shape[-1]

    acc = jnp.zeros((OH * OW, TN), jnp.float32)
    for kh in range(KH):              # small static loops over the kernel window
        for kw in range(KW):
            h0 = kh * dilation
            w0 = kw * dilation
            if stride == 1:
                patch = x_ref[0, h0:h0 + OH, w0:w0 + OW, :]
            else:
                patch = x_ref[0, pl.ds(h0, OH, stride), pl.ds(w0, OW, stride), :]
            wk = w_sc[(kh * KW + kw) * C:(kh * KW + kw + 1) * C, :]
            acc = acc + jnp.dot(patch.reshape(OH * OW, C), wk,
                                preferred_element_type=jnp.float32)
    out = acc + b_sc[...]             # bias added once, after the full reduction
    out_ref[...] = out.reshape(1, OH, OW, TN).astype(out_ref.dtype)


def _round_up(n, m):
    return (n + m - 1) // m * m


def _pick_tile_n(o_pad):
    # Largest lane-dense out-channel tile (<=512) that divides the padded O.
    for cand in (512, 384, 256, 128):
        if cand <= o_pad and o_pad % cand == 0:
            return cand
    return o_pad


def bbb_conv2d(x, w_mu, w_rho, w_eps, b_mu, b_rho, b_eps,
               *, stride=1, padding=0, dilation=1):
    """x: (B, C, H, W) NCHW; w_*: (O, C, KH, KW); b_*: (O,). Returns (B, O, OH, OW)."""
    B, C, H, W = x.shape
    O, _, KH, KW = w_mu.shape
    OH = (H + 2 * padding - dilation * (KH - 1) - 1) // stride + 1
    OW = (W + 2 * padding - dilation * (KW - 1) - 1) // stride + 1
    HP, WP = H + 2 * padding, W + 2 * padding
    K = KH * KW * C

    # Lane-dense output channels: pad O up to a multiple of 128.
    O_pad = _round_up(O, 128)
    tn = _pick_tile_n(O_pad)

    # Layout plumbing (plain JAX, done once): NCHW -> padded NHWC,
    # (O, C, KH, KW) -> (KH*KW*C, O_pad).  Padded channels are all-zero
    # (mu = eps = 0 -> sampled weight/bias 0) and sliced off at the end.
    x_nhwc = jnp.pad(jnp.transpose(x, (0, 2, 3, 1)).astype(jnp.float32),
                     ((0, 0), (padding, padding), (padding, padding), (0, 0)))

    def prep_w(w):
        w2 = jnp.transpose(w, (2, 3, 1, 0)).reshape(K, O).astype(jnp.float32)
        return jnp.pad(w2, ((0, 0), (0, O_pad - O)))

    def prep_b(b):
        return jnp.pad(b.reshape(1, O).astype(jnp.float32),
                       ((0, 0), (0, O_pad - O)))

    wm, wr, we = prep_w(w_mu), prep_w(w_rho), prep_w(w_eps)
    bm, br, be = prep_b(b_mu), prep_b(b_rho), prep_b(b_eps)

    # Grid: (out-channel tiles, batch).  Batch is the inner "arbitrary" axis
    # because the sampled-weight scratch persists across it; the mu/rho/eps
    # blocks are indexed only by j, so Pallas fetches them once per tile.
    w_spec = pl.BlockSpec((K, tn), lambda j, b: (0, j))
    b_spec = pl.BlockSpec((1, tn), lambda j, b: (0, j))
    x_spec = pl.BlockSpec((1, HP, WP, C), lambda j, b: (b, 0, 0, 0))
    o_spec = pl.BlockSpec((1, OH, OW, tn), lambda j, b: (b, 0, 0, j))

    conv = pl.pallas_call(
        functools.partial(_bbb_conv_kernel, KH=KH, KW=KW,
                          stride=stride, dilation=dilation),
        out_shape=jax.ShapeDtypeStruct((B, OH, OW, O_pad), jnp.float32),
        grid=(O_pad // tn, B),
        in_specs=[w_spec, w_spec, w_spec, b_spec, b_spec, b_spec, x_spec],
        out_specs=o_spec,
        scratch_shapes=[pltpu.VMEM((K, tn), jnp.float32),
                        pltpu.VMEM((1, tn), jnp.float32)],
        compiler_params=pltpu.CompilerParams(
            dimension_semantics=("parallel", "arbitrary"),
            vmem_limit_bytes=32 * 1024 * 1024),
    )(wm, wr, we, bm, br, be, x_nhwc)

    # Drop channel padding, back to NCHW.
    return jnp.transpose(conv[..., :O], (0, 3, 1, 2)).astype(x.dtype)


def bbb_conv2d_ref(x, w_mu, w_rho, w_eps, b_mu, b_rho, b_eps,
                   *, stride=1, padding=0, dilation=1):
    weight = w_mu + w_eps * jnp.log1p(jnp.exp(w_rho))
    bias = b_mu + b_eps * jnp.log1p(jnp.exp(b_rho))
    out = jax.lax.conv_general_dilated(
        x, weight, window_strides=(stride, stride),
        padding=[(padding, padding), (padding, padding)],
        rhs_dilation=(dilation, dilation),
        dimension_numbers=('NCHW', 'OIHW', 'NCHW'))
    return out + bias.reshape(1, -1, 1, 1)


if __name__ == "__main__":
    # Small shapes consistent with the module: x (B, C, H, W).
    batch, in_ch, out_ch, hw, ksize = 2, 4, 8, 16, 3
    stride, padding, dilation = 1, 1, 1

    key = jax.random.PRNGKey(0)
    k_x, k_wmu, k_wrho, k_weps, k_bmu, k_brho, k_beps = jax.random.split(key, 7)

    x = jax.random.normal(k_x, (batch, in_ch, hw, hw), dtype=jnp.float32)
    # reset_parameters(): mu ~ N(0, 0.1), rho ~ N(-5, 0.1)
    w_mu = 0.1 * jax.random.normal(k_wmu, (out_ch, in_ch, ksize, ksize), jnp.float32)
    w_rho = -5.0 + 0.1 * jax.random.normal(k_wrho, (out_ch, in_ch, ksize, ksize), jnp.float32)
    b_mu = 0.1 * jax.random.normal(k_bmu, (out_ch,), jnp.float32)
    b_rho = -5.0 + 0.1 * jax.random.normal(k_brho, (out_ch,), jnp.float32)
    # eps is drawn in forward() (torch.randn); kept as explicit tensors here so the
    # module's reuse_eps=True path is representable (sampling happens exactly once).
    w_eps = jax.random.normal(k_weps, (out_ch, in_ch, ksize, ksize), jnp.float32)
    b_eps = jax.random.normal(k_beps, (out_ch,), jnp.float32)

    out = bbb_conv2d(x, w_mu, w_rho, w_eps, b_mu, b_rho, b_eps,
                     stride=stride, padding=padding, dilation=dilation)
    out = jax.block_until_ready(out)

    ref = bbb_conv2d_ref(x, w_mu, w_rho, w_eps, b_mu, b_rho, b_eps,
                         stride=stride, padding=padding, dilation=dilation)
    assert out.shape == (batch, out_ch, hw, hw)
    assert jnp.allclose(out, ref, atol=1e-4, rtol=1e-4), "mismatch vs reference"

    # TODO(synk): kl_loss() is invoked by the parent ModuleWrapper.forward, not by
    # BBBConv2d.forward itself, so it is not part of this forward kernel.
    print("KERNEL_OK")
</pallas_src>

<mosaic_0001>
module attributes {stable_mosaic.version = 11 : i64} {
  func.func @_bbb_conv_kernel(%arg0: i32, %arg1: i32, %arg2: memref<36x128xf32, #tpu.memory_space<vmem>>, %arg3: memref<36x128xf32, #tpu.memory_space<vmem>>, %arg4: memref<36x128xf32, #tpu.memory_space<vmem>>, %arg5: memref<1x128xf32, #tpu.memory_space<vmem>>, %arg6: memref<1x128xf32, #tpu.memory_space<vmem>>, %arg7: memref<1x128xf32, #tpu.memory_space<vmem>>, %arg8: memref<1x18x18x4xf32, #tpu.memory_space<vmem>>, %arg9: memref<1x16x16x128xf32, #tpu.memory_space<vmem>>, %arg10: memref<36x128xf32, #tpu.memory_space<vmem>>, %arg11: memref<1x128xf32, #tpu.memory_space<vmem>>) attributes {dimension_semantics = [#tpu.dimension_semantics<parallel>, #tpu.dimension_semantics<arbitrary>], iteration_bounds = array<i64: 1, 2>, scalar_prefetch = 0 : i64, scratch_operands = 2 : i64, tpu.core_type = #tpu.core_type<tc>, window_params = [{transform_indices = @transform_0, window_bounds = array<i64: 36, 128>}, {transform_indices = @transform_1, window_bounds = array<i64: 36, 128>}, {transform_indices = @transform_2, window_bounds = array<i64: 36, 128>}, {transform_indices = @transform_3, window_bounds = array<i64: 1, 128>}, {transform_indices = @transform_4, window_bounds = array<i64: 1, 128>}, {transform_indices = @transform_5, window_bounds = array<i64: 1, 128>}, {transform_indices = @transform_6, window_bounds = array<i64: 1, 18, 18, 4>}, {transform_indices = @transform_7, window_bounds = array<i64: 1, 16, 16, 128>}]} {
    %c0_i32 = arith.constant 0 : i32
    %0 = arith.cmpi eq, %arg1, %c0_i32 : i32
    %1 = arith.extui %0 : i1 to i32
    %c0_i32_0 = arith.constant 0 : i32
    %2 = arith.cmpi ne, %1, %c0_i32_0 : i32
    scf.if %2 {
      %c0_59 = arith.constant 0 : index
      %c0_60 = arith.constant 0 : index
      %63 = vector.load %arg2[%c0_59, %c0_60] : memref<36x128xf32, #tpu.memory_space<vmem>>, vector<36x128xf32>
      %c0_61 = arith.constant 0 : index
      %c0_62 = arith.constant 0 : index
      %64 = vector.load %arg4[%c0_61, %c0_62] : memref<36x128xf32, #tpu.memory_space<vmem>>, vector<36x128xf32>
      %c0_63 = arith.constant 0 : index
      %c0_64 = arith.constant 0 : index
      %65 = vector.load %arg3[%c0_63, %c0_64] : memref<36x128xf32, #tpu.memory_space<vmem>>, vector<36x128xf32>
      %cst_65 = arith.constant 0.000000e+00 : f32
      %66 = vector.broadcast %cst_65 : f32 to vector<36x128xf32>
      %67 = arith.maximumf %65, %66 : vector<36x128xf32>
      %68 = math.absf %65 : vector<36x128xf32>
      %cst_66 = arith.constant 0.000000e+00 : f32
      %69 = vector.broadcast %cst_66 : f32 to vector<36x128xf32>
      %70 = arith.subf %69, %68 : vector<36x128xf32>
      %71 = math.exp %70 : vector<36x128xf32>
      %72 = math.log1p %71 : vector<36x128xf32>
      %73 = arith.addf %67, %72 : vector<36x128xf32>
      %74 = arith.mulf %64, %73 : vector<36x128xf32>
      %75 = arith.addf %63, %74 : vector<36x128xf32>
      %c0_67 = arith.constant 0 : index
      %c0_68 = arith.constant 0 : index
      %76 = vector.load %arg10[%c0_67, %c0_68] : memref<36x128xf32, #tpu.memory_space<vmem>>, vector<36x128xf32>
      tpu.vector_store %arg10[%c0_67, %c0_68], %75 {strides = array<i32>} : memref<36x128xf32, #tpu.memory_space<vmem>>, vector<36x128xf32>,
      %c0_69 = arith.constant 0 : index
      %c0_70 = arith.constant 0 : index
      %77 = vector.load %arg5[%c0_69, %c0_70] : memref<1x128xf32, #tpu.memory_space<vmem>>, vector<1x128xf32>
      %c0_71 = arith.constant 0 : index
      %c0_72 = arith.constant 0 : index
      %78 = vector.load %arg7[%c0_71, %c0_72] : memref<1x128xf32, #tpu.memory_space<vmem>>, vector<1x128xf32>
      %c0_73 = arith.constant 0 : index
      %c0_74 = arith.constant 0 : index
      %79 = vector.load %arg6[%c0_73, %c0_74] : memref<1x128xf32, #tpu.memory_space<vmem>>, vector<1x128xf32>
      %cst_75 = arith.constant 0.000000e+00 : f32
      %80 = vector.broadcast %cst_75 : f32 to vector<1x128xf32>
      %81 = arith.maximumf %79, %80 : vector<1x128xf32>
      %82 = math.absf %79 : vector<1x128xf32>
      %cst_76 = arith.constant 0.000000e+00 : f32
      %83 = vector.broadcast %cst_76 : f32 to vector<1x128xf32>
      %84 = arith.subf %83, %82 : vector<1x128xf32>
      %85 = math.exp %84 : vector<1x128xf32>
      %86 = math.log1p %85 : vector<1x128xf32>
      %87 = arith.addf %81, %86 : vector<1x128xf32>
      %88 = arith.mulf %78, %87 : vector<1x128xf32>
      %89 = arith.addf %77, %88 : vector<1x128xf32>
      %c0_77 = arith.constant 0 : index
      %c0_78 = arith.constant 0 : index
      %90 = vector.load %arg11[%c0_77, %c0_78] : memref<1x128xf32, #tpu.memory_space<vmem>>, vector<1x128xf32>
      tpu.vector_store %arg11[%c0_77, %c0_78], %89 {strides = array<i32>} : memref<1x128xf32, #tpu.memory_space<vmem>>, vector<1x128xf32>,
    } else {
    }
    %cst = arith.constant 0.000000e+00 : f32
    %3 = vector.broadcast %cst : f32 to vector<256x128xf32>
    %c0 = arith.constant 0 : index
    %c0_1 = arith.constant 0 : index
    %c0_2 = arith.constant 0 : index
    %c0_3 = arith.constant 0 : index
    %4 = vector.load %arg8[%c0, %c0_1, %c0_2, %c0_3] : memref<1x18x18x4xf32, #tpu.memory_space<vmem>>, vector<1x16x16x4xf32>
    %5 = vector.shape_cast %4 : vector<1x16x16x4xf32> to vector<16x16x4xf32>
    %c0_4 = arith.constant 0 : index
    %c0_5 = arith.constant 0 : index
    %6 = vector.load %arg10[%c0_4, %c0_5] : memref<36x128xf32, #tpu.memory_space<vmem>>, vector<4x128xf32>
    %7 = vector.shape_cast %5 : vector<16x16x4xf32> to vector<256x4xf32>
    %cst_6 = arith.constant dense<0.000000e+00> : vector<256x128xf32>
    %8 = tpu.matmul %7, %6, %cst_6 {dimension_numbers = #tpu.dot_dimension_numbers<[1], [0], [0], [1], [0, 0, 1, 1], [], []>} : vector<256x4xf32>, vector<4x128xf32>, vector<256x128xf32> -> vector<256x128xf32>
    %9 = arith.addf %3, %8 : vector<256x128xf32>
    %c0_7 = arith.constant 0 : index
    %c0_8 = arith.constant 0 : index
    %c1 = arith.constant 1 : index
    %c0_9 = arith.constant 0 : index
    %10 = vector.load %arg8[%c0_7, %c0_8, %c1, %c0_9] : memref<1x18x18x4xf32, #tpu.memory_space<vmem>>, vector<1x16x16x4xf32>
    %11 = vector.shape_cast %10 : vector<1x16x16x4xf32> to vector<16x16x4xf32>
    %c4 = arith.constant 4 : index
    %c0_10 = arith.constant 0 : index
    %12 = vector.load %arg10[%c4, %c0_10] : memref<36x128xf32, #tpu.memory_space<vmem>>, vector<4x128xf32>
    %13 = vector.shape_cast %11 : vector<16x16x4xf32> to vector<256x4xf32>
    %cst_11 = arith.constant dense<0.000000e+00> : vector<256x128xf32>
    %14 = tpu.matmul %13, %12, %cst_11 {dimension_numbers = #tpu.dot_dimension_numbers<[1], [0], [0], [1], [0, 0, 1, 1], [], []>} : vector<256x4xf32>, vector<4x128xf32>, vector<256x128xf32> -> vector<256x128xf32>
    %15 = arith.addf %9, %14 : vector<256x128xf32>
    %c0_12 = arith.constant 0 : index
    %c0_13 = arith.constant 0 : index
    %c2 = arith.constant 2 : index
    %c0_14 = arith.constant 0 : index
    %16 = vector.load %arg8[%c0_12, %c0_13, %c2, %c0_14] : memref<1x18x18x4xf32, #tpu.memory_space<vmem>>, vector<1x16x16x4xf32>
    %17 = vector.shape_cast %16 : vector<1x16x16x4xf32> to vector<16x16x4xf32>
    %c8 = arith.constant 8 : index
    %c0_15 = arith.constant 0 : index
    %18 = vector.load %arg10[%c8, %c0_15] : memref<36x128xf32, #tpu.memory_space<vmem>>, vector<4x128xf32>
    %19 = vector.shape_cast %17 : vector<16x16x4xf32> to vector<256x4xf32>
    %cst_16 = arith.constant dense<0.000000e+00> : vector<256x128xf32>
    %20 = tpu.matmul %19, %18, %cst_16 {dimension_numbers = #tpu.dot_dimension_numbers<[1], [0], [0], [1], [0, 0, 1, 1], [], []>} : vector<256x4xf32>, vector<4x128xf32>, vector<256x128xf32> -> vector<256x128xf32>
    %21 = arith.addf %15, %20 : vector<256x128xf32>
    %c0_17 = arith.constant 0 : index
    %c1_18 = arith.constant 1 : index
    %c0_19 = arith.constant 0 : index
    %c0_20 = arith.constant 0 : index
    %22 = vector.load %arg8[%c0_17, %c1_18, %c0_19, %c0_20] : memref<1x18x18x4xf32, #tpu.memory_space<vmem>>, vector<1x16x16x4xf32>
    %23 = vector.shape_cast %22 : vector<1x16x16x4xf32> to vector<16x16x4xf32>
    %c12 = arith.constant 12 : index
    %c0_21 = arith.constant 0 : index
    %24 = vector.load %arg10[%c12, %c0_21] : memref<36x128xf32, #tpu.memory_space<vmem>>, vector<4x128xf32>
    %25 = vector.shape_cast %23 : vector<16x16x4xf32> to vector<256x4xf32>
    %cst_22 = arith.constant dense<0.000000e+00> : vector<256x128xf32>
    %26 = tpu.matmul %25, %24, %cst_22 {dimension_numbers = #tpu.dot_dimension_numbers<[1], [0], [0], [1], [0, 0, 1, 1], [], []>} : vector<256x4xf32>, vector<4x128xf32>, vector<256x128xf32> -> vector<256x128xf32>
    %27 = arith.addf %21, %26 : vector<256x128xf32>
    %c0_23 = arith.constant 0 : index
    %c1_24 = arith.constant 1 : index
    %c1_25 = arith.constant 1 : index
    %c0_26 = arith.constant 0 : index
    %28 = vector.load %arg8[%c0_23, %c1_24, %c1_25, %c0_26] : memref<1x18x18x4xf32, #tpu.memory_space<vmem>>, vector<1x16x16x4xf32>
    %29 = vector.shape_cast %28 : vector<1x16x16x4xf32> to vector<16x16x4xf32>
    %c16 = arith.constant 16 : index
    %c0_27 = arith.constant 0 : index
    %30 = vector.load %arg10[%c16, %c0_27] : memref<36x128xf32, #tpu.memory_space<vmem>>, vector<4x128xf32>
    %31 = vector.shape_cast %29 : vector<16x16x4xf32> to vector<256x4xf32>
    %cst_28 = arith.constant dense<0.000000e+00> : vector<256x128xf32>
    %32 = tpu.matmul %31, %30, %cst_28 {dimension_numbers = #tpu.dot_dimension_numbers<[1], [0], [0], [1], [0, 0, 1, 1], [], []>} : vector<256x4xf32>, vector<4x128xf32>, vector<256x128xf32> -> vector<256x128xf32>
    %33 = arith.addf %27, %32 : vector<256x128xf32>
    %c0_29 = arith.constant 0 : index
    %c1_30 = arith.constant 1 : index
    %c2_31 = arith.constant 2 : index
    %c0_32 = arith.constant 0 : index
    %34 = vector.load %arg8[%c0_29, %c1_30, %c2_31, %c0_32] : memref<1x18x18x4xf32, #tpu.memory_space<vmem>>, vector<1x16x16x4xf32>
    %35 = vector.shape_cast %34 : vector<1x16x16x4xf32> to vector<16x16x4xf32>
    %c20 = arith.constant 20 : index
    %c0_33 = arith.constant 0 : index
    %36 = vector.load %arg10[%c20, %c0_33] : memref<36x128xf32, #tpu.memory_space<vmem>>, vector<4x128xf32>
    %37 = vector.shape_cast %35 : vector<16x16x4xf32> to vector<256x4xf32>
    %cst_34 = arith.constant dense<0.000000e+00> : vector<256x128xf32>
    %38 = tpu.matmul %37, %36, %cst_34 {dimension_numbers = #tpu.dot_dimension_numbers<[1], [0], [0], [1], [0, 0, 1, 1], [], []>} : vector<256x4xf32>, vector<4x128xf32>, vector<256x128xf32> -> vector<256x128xf32>
    %39 = arith.addf %33, %38 : vector<256x128xf32>
    %c0_35 = arith.constant 0 : index
    %c2_36 = arith.constant 2 : index
    %c0_37 = arith.constant 0 : index
    %c0_38 = arith.constant 0 : index
    %40 = vector.load %arg8[%c0_35, %c2_36, %c0_37, %c0_38] : memref<1x18x18x4xf32, #tpu.memory_space<vmem>>, vector<1x16x16x4xf32>
    %41 = vector.shape_cast %40 : vector<1x16x16x4xf32> to vector<16x16x4xf32>
    %c24 = arith.constant 24 : index
    %c0_39 = arith.constant 0 : index
    %42 = vector.load %arg10[%c24, %c0_39] : memref<36x128xf32, #tpu.memory_space<vmem>>, vector<4x128xf32>
    %43 = vector.shape_cast %41 : vector<16x16x4xf32> to vector<256x4xf32>
    %cst_40 = arith.constant dense<0.000000e+00> : vector<256x128xf32>
    %44 = tpu.matmul %43, %42, %cst_40 {dimension_numbers = #tpu.dot_dimension_numbers<[1], [0], [0], [1], [0, 0, 1, 1], [], []>} : vector<256x4xf32>, vector<4x128xf32>, vector<256x128xf32> -> vector<256x128xf32>
    %45 = arith.addf %39, %44 : vector<256x128xf32>
    %c0_41 = arith.constant 0 : index
    %c2_42 = arith.constant 2 : index
    %c1_43 = arith.constant 1 : index
    %c0_44 = arith.constant 0 : index
    %46 = vector.load %arg8[%c0_41, %c2_42, %c1_43, %c0_44] : memref<1x18x18x4xf32, #tpu.memory_space<vmem>>, vector<1x16x16x4xf32>
    %47 = vector.shape_cast %46 : vector<1x16x16x4xf32> to vector<16x16x4xf32>
    %c28 = arith.constant 28 : index
    %c0_45 = arith.constant 0 : index
    %48 = vector.load %arg10[%c28, %c0_45] : memref<36x128xf32, #tpu.memory_space<vmem>>, vector<4x128xf32>
    %49 = vector.shape_cast %47 : vector<16x16x4xf32> to vector<256x4xf32>
    %cst_46 = arith.constant dense<0.000000e+00> : vector<256x128xf32>
    %50 = tpu.matmul %49, %48, %cst_46 {dimension_numbers = #tpu.dot_dimension_numbers<[1], [0], [0], [1], [0, 0, 1, 1], [], []>} : vector<256x4xf32>, vector<4x128xf32>, vector<256x128xf32> -> vector<256x128xf32>
    %51 = arith.addf %45, %50 : vector<256x128xf32>
    %c0_47 = arith.constant 0 : index
    %c2_48 = arith.constant 2 : index
    %c2_49 = arith.constant 2 : index
    %c0_50 = arith.constant 0 : index
    %52 = vector.load %arg8[%c0_47, %c2_48, %c2_49, %c0_50] : memref<1x18x18x4xf32, #tpu.memory_space<vmem>>, vector<1x16x16x4xf32>
    %53 = vector.shape_cast %52 : vector<1x16x16x4xf32> to vector<16x16x4xf32>
    %c32 = arith.constant 32 : index
    %c0_51 = arith.constant 0 : index
    %54 = vector.load %arg10[%c32, %c0_51] : memref<36x128xf32, #tpu.memory_space<vmem>>, vector<4x128xf32>
    %55 = vector.shape_cast %53 : vector<16x16x4xf32> to vector<256x4xf32>
    %cst_52 = arith.constant dense<0.000000e+00> : vector<256x128xf32>
    %56 = tpu.matmul %55, %54, %cst_52 {dimension_numbers = #tpu.dot_dimension_numbers<[1], [0], [0], [1], [0, 0, 1, 1], [], []>} : vector<256x4xf32>, vector<4x128xf32>, vector<256x128xf32> -> vector<256x128xf32>
    %57 = arith.addf %51, %56 : vector<256x128xf32>
    %c0_53 = arith.constant 0 : index
    %c0_54 = arith.constant 0 : index
    %58 = vector.load %arg11[%c0_53, %c0_54] : memref<1x128xf32, #tpu.memory_space<vmem>>, vector<1x128xf32>
    %59 = vector.broadcast %58 : vector<1x128xf32> to vector<256x128xf32>
    %60 = arith.addf %57, %59 : vector<256x128xf32>
    %61 = vector.shape_cast %60 : vector<256x128xf32> to vector<1x16x16x128xf32>
    %c0_55 = arith.constant 0 : index
    %c0_56 = arith.constant 0 : index
    %c0_57 = arith.constant 0 : index
    %c0_58 = arith.constant 0 : index
    %62 = vector.load %arg9[%c0_55, %c0_56, %c0_57, %c0_58] : memref<1x16x16x128xf32, #tpu.memory_space<vmem>>, vector<1x16x16x128xf32>
    tpu.vector_store %arg9[%c0_55, %c0_56, %c0_57, %c0_58], %61 {strides = array<i32>} : memref<1x16x16x128xf32, #tpu.memory_space<vmem>>, vector<1x16x16x128xf32>,
    return
  }
  func.func @transform_0(%arg0: i32, %arg1: i32) -> (i32, i32) {
    %c0_i32 = arith.constant 0 : i32
    %c0_i32_0 = arith.constant 0 : i32
    return %c0_i32, %arg0 : i32, i32
  }
  func.func @transform_1(%arg0: i32, %arg1: i32) -> (i32, i32) {
    %c0_i32 = arith.constant 0 : i32
    %c0_i32_0 = arith.constant 0 : i32
    return %c0_i32, %arg0 : i32, i32
  }
  func.func @transform_2(%arg0: i32, %arg1: i32) -> (i32, i32) {
    %c0_i32 = arith.constant 0 : i32
    %c0_i32_0 = arith.constant 0 : i32
    return %c0_i32, %arg0 : i32, i32
  }
  func.func @transform_3(%arg0: i32, %arg1: i32) -> (i32, i32) {
    %c0_i32 = arith.constant 0 : i32
    %c0_i32_0 = arith.constant 0 : i32
    return %c0_i32, %arg0 : i32, i32
  }
  func.func @transform_4(%arg0: i32, %arg1: i32) -> (i32, i32) {
    %c0_i32 = arith.constant 0 : i32
    %c0_i32_0 = arith.constant 0 : i32
    return %c0_i32, %arg0 : i32, i32
  }
  func.func @transform_5(%arg0: i32, %arg1: i32) -> (i32, i32) {
    %c0_i32 = arith.constant 0 : i32
    %c0_i32_0 = arith.constant 0 : i32
    return %c0_i32, %arg0 : i32, i32
  }
  func.func @transform_6(%arg0: i32, %arg1: i32) -> (i32, i32, i32, i32) {
    %c0_i32 = arith.constant 0 : i32
    %c0_i32_0 = arith.constant 0 : i32
    %c0_i32_1 = arith.constant 0 : i32
    %c0_i32_2 = arith.constant 0 : i32
    return %arg1, %c0_i32, %c0_i32_0, %c0_i32_1 : i32, i32, i32, i32
  }
  func.func @transform_7(%arg0: i32, %arg1: i32) -> (i32, i32, i32, i32) {
    %c0_i32 = arith.constant 0 : i32
    %c0_i32_0 = arith.constant 0 : i32
    %c0_i32_1 = arith.constant 0 : i32
    return %arg1, %c0_i32, %c0_i32_0, %arg0 : i32, i32, i32, i32
  }
}

</mosaic_0001>

<bundles_post_ra>
// kernel: tpu_custom_call.1
= control target key start
LH: loop header
LB: loop body
LE: loop exit
PB: predicated region body
PF: predicated region fallthrough
CT: control target
= control target key end

     0   :  { %12 = vsyncpa [#allocation5], 0  ;;  %s7117_s0 = inlined_call_operand.vmem [shape: f32[36,128], index: 0, kind: input, shape index: {}]   ;;  %s7118_s1 = inlined_call_operand.vmem [shape: f32[36,128], index: 1, kind: input, shape index: {}]   ;;  %s7119_s2 = inlined_call_operand.vmem [shape: f32[36,128], index: 2, kind: input, shape index: {}]   ;;  %s7120_s3 = inlined_call_operand.vmem [shape: f32[1,128], index: 3, kind: input, shape index: {}]   ;;  %s7121_s4 = inlined_call_operand.vmem [shape: f32[1,128], index: 4, kind: input, shape index: {}]   ;;  %s7122_s5 = inlined_call_operand.vmem [shape: f32[1,128], index: 5, kind: input, shape index: {}]   ;;  %s7123_s6 = inlined_call_operand.vmem [shape: f32[2,18,18,4], index: 6, kind: input, shape index: {}]   ;;  %s7124_s7 = inlined_call_operand.hbm [shape: f32[2,16,16,128], index: 7, kind: output, shape index: {}]  }
   0x1   :  { %14 = vsyncpa [#allocation5 + $0x1], 0  ;;  %s5914_s24 = smov 0   ;;  %s5916_s25 = smov 0  }
   0x2   :  { %s5918_s26 = smov 0   ;;  %s5920_s27 = smov 0  }
   0x3   :  { %s5922_s28 = smov 0   ;;  %s5924_s29 = smov 0  }
   0x4 LB: > { %s4194_s30 = sadd.s32 4294967295, %s5869_s29   ;;  %s4195_s8 = sadd.s32 4294967294, %s5869_s29   ;;  %s5869_s29 = sphi %s5924_s29, %s20_s29   ;;  %s5865_s28 = sphi %s5922_s28, %s7252_s28   ;;  %s5861_s27 = sphi %s5920_s27, %s7251_s27   ;;  %s5857_s26 = sphi %s5918_s26, %s7250_s26   ;;  %s5853_s25 = sphi %s5916_s25, %s7249_s25   ;;  %s5849_s24 = sphi %s5914_s24, %s7248_s24  }
   0x5   : > { %s29_s9 = sadd.s32 1, %s5865_s28  ;;  %s223_s10 = sadd.s32 1, %s5857_s26 }
   0x6   : > { %p30_p0 = scmp.ge.s32.totalorder %s29_s9, 2  ;;  %p233_p1 = scmp.ne.s32.totalorder %s5857_s26, %s5853_s25 }
   0x7   : > { %p234_p2 = scmp.eq.s32.totalorder %s4194_s30, 1  ;;  %p239_p3 = scmp.ne.s32.totalorder %s5853_s25, %s5849_s24 }
   0x8   : > { %s7254_s9 = smov (%p30_p0, %s29_s9), 0  ;;  %p240_p5 = scmp.eq.s32.totalorder %s4195_s8, 1 }
   0x9   : > { %p5954_p4 = por %p234_p2, %p233_p1  ;;  %s218_s12 = ssub.s32 %s5865_s28, %s7254_s9 }
   0xa   : > { %p4204_p6 = scmp.ge.s32.totalorder %s5869_s29, 1  ;;  %p221_p7 = scmp.eq.s32.totalorder %s218_s12, 0 }
   0xb   : > { %p5961_p8 = por %p240_p5, %p239_p3  ;;  %p305_p9 = scmp.lt.s32.totalorder %s5869_s29, 3 }
   0xc   : > { %s5967_s14 = scalar_select %p221_p7, %s5857_s26, %s223_s10  }
   0xd   : > { %p306_p10 = pnand %p4204_p6, %p305_p9 }
   0xf   : > { %309 = sbr.rel (%p306_p10) target bundleno = 593 (0x251), region = 48 }
  0x16   : > { %s355_s15 = sand.u32 1, %s5853_s25   ;;  %p379_p11 = scmp.lt.s32.totalorder %s5861_s27, 1 }
  0x17   : > { %s4205_s16 = sshll.u32 %s355_s15, 8  ;;  %p4207_p12 = scmp.ne.s32.totalorder %s5861_s27, 0 }
  0x18   : > { %s380_s17 = scalar_select %p379_p11, %s5861_s27, 1 }
  0x19   : > { %s5979_s22 = scalar_lea.vmem [#allocation4], %s4205_s16  ;;  %387 = sbr.rel (%p4207_p12) target bundleno = 71 (0x47), region = 52  ;;  %v5985_v0 = vld [vmem:[%s7118_s1] sm:$0xff] (!%p4207_p12)  ;;  %v5991_v2 = vld [vmem:[%s7118_s1 + $0x8] sm:$0xff] (!%p4207_p12)  ;;  %v5997_v4 = vld [vmem:[%s7118_s1 + $0x10] sm:$0xff] (!%p4207_p12) }
  0x1a   : > { %s5709_s18 = smul.u32 432, %s380_s17  ;;  %v408_v1 = vand.u32 (!%p4207_p12), 2147483647, %v5985_v0  ;;  %v409_v3 = vand.u32 (!%p4207_p12), 2147483647, %v5991_v2  ;;  %v6003_v8 = vld [vmem:[%s7118_s1 + $0x18] sm:$0xff] (!%p4207_p12) }
  0x1b   : > { %v410_v6 = vand.u32 (!%p4207_p12), 2147483647, %v5997_v4  ;;  %v411_v11 = vand.u32 (!%p4207_p12), 2147483647, %v6003_v8  ;;  %v6009_v13 = vld [vmem:[%s7118_s1 + $0x20] sm:$0xf] (!%p4207_p12) }
  0x1c   : > { %s5977_s21 = scalar_lea.vmem %s7123_s6, %s5709_s18  ;;  %v413_v5 = vsub.f32 (!%p4207_p12), 0.0, %v408_v1  ;;  %v414_v7 = vsub.f32 (!%p4207_p12), 0.0, %v409_v3  ;;  %v412_v16 = vand.u32 (!%p4207_p12), 2147483647, %v6009_v13  ;;  %v6015_v17 = vld [vmem:[%s7121_s4] sm:$0x1] (!%p4207_p12) }
  0x1d   : > { %v415_v10 = vsub.f32 (!%p4207_p12), 0.0, %v410_v6  ;;  %v416_v15 = vsub.f32 (!%p4207_p12), 0.0, %v411_v11  ;;  %v497_v19 = vand.u32 (!%p4207_p12), 2147483647, %v6015_v17  ;;  %v403_v46 = vmax.f32 (!%p4207_p12), %v5985_v0, 0.0  ;;  %v394_v11 = vld [vmem:[%s7119_s2 + $0x8] sm:$0xff] (!%p4207_p12) }
  0x1e   : > { %v418_v9 = vmul.f32 (!%p4207_p12), 1.442695, %v413_v5  ;;  %v420_v12 = vmul.f32 (!%p4207_p12), 1.442695, %v414_v7  ;;  %v417_v20 = vsub.f32 (!%p4207_p12), 0.0, %v412_v16  ;;  %v404_v50 = vmax.f32 (!%p4207_p12), %v5991_v2, 0.0 }
  0x1f   : > { %v422_v14 = vmul.f32 (!%p4207_p12), 1.442695, %v415_v10  ;;  %v424_v18 = vmul.f32 (!%p4207_p12), 1.442695, %v416_v15  ;;  %v498_v21 = vsub.f32 (!%p4207_p12), 0.0, %v497_v19  ;;  %v405_v51 = vmax.f32 (!%p4207_p12), %v5997_v4, 0.0 }
  0x20   : > { %5767 = vpow2.f32 %v418_v9  ;;  %v426_v22 = vmul.f32 1.442695, %v417_v20  ;;  %v406_v56 = vmax.f32 %v6003_v8, 0.0  ;;  %v393_v4 = vld [vmem:[%s7119_s2] sm:$0xff]  ;;  %v407_v15 = vmax.f32 %v6009_v13, 0.0  ;;  %v395_v19 = vld [vmem:[%s7119_s2 + $0x10] sm:$0xff] }
  0x21   : > { %5769 = vpow2.f32 %v420_v12  ;;  %v499_v23 = vmul.f32 1.442695, %v498_v21  ;;  %v388_v16 = vld [vmem:[%s7117_s0] sm:$0xff]  ;;  %v389_v13 = vld [vmem:[%s7117_s0 + $0x8] sm:$0xff] }
  0x22   : > { %5771 = vpow2.f32 %v422_v14 }
  0x23   : > { %5773 = vpow2.f32 %v424_v18 }
  0x24   : > { %5775 = vpow2.f32 %v426_v22  ;;  %v496_v22 = vmax.f32 %v6015_v17, 0.0  ;;  %v396_v17 = vld [vmem:[%s7119_s2 + $0x18] sm:$0xff] }
  0x25   : > { %5777 = vpow2.f32 %v499_v23 }
  0x2a   : > { %v5768_v24 = vpop.eup %5767 }
  0x2b   : > { %v5770_v25 = vpop.eup %5769  ;;  %v428_v26 = vadd.f32 1.0, %v5768_v24  ;;  %v431_v31 = vmul.f32 -0.5, %v5768_v24  ;;  %v434_v40 = vand.u32 2147483647, %v5768_v24 }
  0x2c   : > { %v5772_v27 = vpop.eup %5771  ;;  %v437_v28 = vadd.f32 1.0, %v5770_v25  ;;  %v440_v32 = vmul.f32 -0.5, %v5770_v25  ;;  %v443_v43 = vand.u32 2147483647, %v5770_v25 }
  0x2d   : > { %5779 = vlog2.f32 %v428_v26  ;;  %v446_v29 = vadd.f32 1.0, %v5772_v27  ;;  %v5774_v30 = vpop.eup %5773  ;;  %v449_v34 = vmul.f32 -0.5, %v5772_v27  ;;  %v432_v38 = vadd.f32 1.0, %v431_v31 }
  0x2e   : > { %5781 = vlog2.f32 %v437_v28  ;;  %v455_v33 = vadd.f32 1.0, %v5774_v30  ;;  %v5776_v35 = vpop.eup %5775  ;;  %v458_v36 = vmul.f32 -0.5, %v5774_v30  ;;  %v441_v41 = vadd.f32 1.0, %v440_v32 }
  0x2f   : > { %5783 = vlog2.f32 %v446_v29  ;;  %v5778_v37 = vpop.eup %5777  ;;  %v464_v39 = vadd.f32 1.0, %v5776_v35  ;;  %v450_v44 = vadd.f32 1.0, %v449_v34  ;;  %v452_v45 = vand.u32 2147483647, %v5772_v27  ;;  %v390_v29 = vld [vmem:[%s7117_s0 + $0x10] sm:$0xff] }
  0x30   : > { %5785 = vlog2.f32 %v455_v33  ;;  %v501_v42 = vadd.f32 1.0, %v5778_v37  ;;  %v459_v47 = vadd.f32 1.0, %v458_v36  ;;  %v467_v48 = vmul.f32 -0.5, %v5776_v35 }
  0x31   : > { %5787 = vlog2.f32 %v464_v39  ;;  %v433_v49 = vmul.f32 %v5768_v24, %v432_v38  ;;  %v504_v52 = vmul.f32 -0.5, %v5778_v37  ;;  %vm6021_vm0 = vcmp.lt.f32.partialorder %v434_v40, 0.0004427343  ;;  %v391_v40 = vld [vmem:[%s7117_s0 + $0x18] sm:$0xff] }
  0x32   : > { %5789 = vlog2.f32 %v501_v42  ;;  %v442_v55 = vmul.f32 %v5770_v25, %v441_v41  ;;  %v461_v57 = vand.u32 2147483647, %v5774_v30  ;;  %vm6026_vm1 = vcmp.lt.f32.partialorder %v443_v43, 0.0004427343 }
  0x33   : > { %v451_v61 = vmul.f32 %v5772_v27, %v450_v44  ;;  %vm6030_vm2 = vcmp.lt.f32.partialorder %v452_v45, 0.0004427343  ;;  %v460_v1 = vmul.f32 %v5774_v30, %v459_v47  ;;  %v468_v2 = vadd.f32 1.0, %v467_v48 }
  0x34   : > { %v470_v3 = vand.u32 2147483647, %v5776_v35  ;;  %v505_v7 = vadd.f32 1.0, %v504_v52  ;;  %v507_v8 = vand.u32 2147483647, %v5778_v37 }
  0x35   : > { %vm6044_vm3 = vcmp.lt.f32.partialorder %v461_v57, 0.0004427343  ;;  %v469_v25 = vmul.f32 %v5776_v35, %v468_v2  ;;  %v493_v52 = vld [vmem:[%s7120_s3] sm:$0x1] }
  0x36   : > { %vm6061_vm4 = vcmp.lt.f32.partialorder %v470_v3, 0.0004427343  ;;  %v506_v31 = vmul.f32 %v5778_v37, %v505_v7  ;;  %vm6073_vm5 = vcmp.lt.f32.partialorder %v507_v8, 0.0004427343  ;;  %v397_v37 = vld [vmem:[%s7119_s2 + $0x20] sm:$0xf] }
  0x37   : > { %v5780_v53 = vpop.eup %5779 }
  0x38   : > { %v5782_v58 = vpop.eup %5781  ;;  %v430_v59 = vmul.f32 0.6931472, %v5780_v53 }
  0x39   : > { %v5784_v63 = vpop.eup %5783  ;;  %v439_v0 = vmul.f32 0.6931472, %v5782_v58 }
  0x3a   : > { %v436_v5 = vsel %vm6021_vm0, %v433_v49, %v430_v59  ;;  %v448_v6 = vmul.f32 0.6931472, %v5784_v63  ;;  %v5786_v9 = vpop.eup %5785  ;;  %v392_v49 = vld [vmem:[%s7117_s0 + $0x20] sm:$0xf] }
  0x3b   : > { %v473_v10 = vadd.f32 %v436_v5, %v403_v46  ;;  %v445_v12 = vsel %vm6026_vm1, %v442_v55, %v439_v0  ;;  %v457_v21 = vmul.f32 0.6931472, %v5786_v9  ;;  %v5788_v27 = vpop.eup %5787  ;;  %v494_v46 = vld [vmem:[%s7122_s5] sm:$0x1] }
  0x3c   : > { %v474_v18 = vadd.f32 %v445_v12, %v404_v50  ;;  %v454_v20 = vsel %vm6030_vm2, %v451_v61, %v448_v6  ;;  %v5790_v33 = vpop.eup %5789  ;;  %v466_v38 = vmul.f32 0.6931472, %v5788_v27 }
  0x3d   : > { %v478_v23 = vmul.f32 %v473_v10, %v393_v4  ;;  %v475_v24 = vadd.f32 %v454_v20, %v405_v51  ;;  %v463_v30 = vsel %vm6044_vm3, %v460_v1, %v457_v21  ;;  %v503_v41 = vmul.f32 0.6931472, %v5790_v33 }
  0x3e   : > { %v479_v28 = vmul.f32 %v474_v18, %v394_v11  ;;  %v476_v36 = vadd.f32 %v463_v30, %v406_v56  ;;  %v472_v44 = vsel %vm6061_vm4, %v469_v25, %v466_v38 }
  0x3f   : > { %v483_v34 = vadd.f32 %v478_v23, %v388_v16  ;;  %v480_v35 = vmul.f32 %v475_v24, %v395_v19  ;;  %v477_v45 = vadd.f32 %v472_v44, %v407_v15  ;;  %v509_v47 = vsel %vm6073_vm5, %v506_v31, %v503_v41 }
  0x40   : > { %v484_v39 = vadd.f32 %v479_v28, %v389_v13  ;;  %v481_v43 = vmul.f32 %v476_v36, %v396_v17  ;;  %v510_v50 = vadd.f32 %v509_v47, %v496_v22 }
  0x41   : > { %488 = vst [vmem:[#allocation2] sm:$0xff] %v483_v34  ;;  %v485_v42 = vadd.f32 %v480_v35, %v390_v29  ;;  %v482_v51 = vmul.f32 %v477_v45, %v397_v37 }
  0x42   : > { %489 = vst [vmem:[#allocation2 + $0x8] sm:$0xff] %v484_v39  ;;  %v486_v48 = vadd.f32 %v481_v43, %v391_v40  ;;  %v511_v53 = vmul.f32 %v510_v50, %v494_v46 }
  0x43   : > { %490 = vst [vmem:[#allocation2 + $0x10] sm:$0xff] %v485_v42  ;;  %v487_v54 = vadd.f32 %v482_v51, %v392_v49 }
  0x44   : > { %491 = vst [vmem:[#allocation2 + $0x18] sm:$0xff] %v486_v48  ;;  %v512_v55 = vadd.f32 %v511_v53, %v493_v52 }
  0x45   : > { %492 = vst [vmem:[#allocation2 + $0x20] sm:$0xf] %v487_v54 }
  0x46   : > { %513 = vst [vmem:[#allocation3] sm:$0x1] %v512_v55 }
  0x47 PF: > { %vm677_vm6 = vcmask 1043456   ;;  %v547_v58 = vld [vmem:[%s5977_s21 + $0x1] sm:$0xff]  ;;  %vm580_vm7 = vcmask 31744   ;;  %v4372_v59 = vld [vmem:[%s5977_s21 + $0x19] sm:$0xff]  ;;  %v548_v60 = vld [vmem:[%s5977_s21 + $0x9] sm:$0xff]  ;;  %s4041_s17 = sshll.u32 %s5979_s22, 4  ;;  %s7064_s17 = int_to_ptr.vmem [resolvable:$true] %s4041_s17 }
  0x48   : > { %v579_v56 = vld [vmem:[#allocation2 + $0x4] sm:$0xf]  ;;  %v546_v61 = vld [vmem:[#allocation2] sm:$0xf]  ;;  %5003 = vmatprep.mubr.msk.f32.mxu1 %vm580_vm7, %v547_v58  ;;  %5203 = vmatprep.mubr.msk.f32.mxu0 %vm580_vm7, %v4372_v59  ;;  %v6113_v0 = vld [vmem:[%s5977_s21 + $0x31] sm:$0xff]  ;;  %s5791_s23 = scalar_lea.vmem %s7064_s17, 4096 }
  0x49   : > { %5001 = vmatprep.subr.msk.mxu1 %vm677_vm6, %v579_v56  ;;  %v4373_v62 = vld [vmem:[%s5977_s21 + $0x21] sm:$0xff]  ;;  %v6120_v1 = vld [vmem:[%s5977_s21 + $0x39] sm:$0xff]  ;;  %v6126_v2 = vld [vmem:[%s5977_s21 + $0x49] sm:$0xff]  ;;  %p5792_p13 = scmp.ne.s32.totalorder %s7064_s17, %s5791_s23  ;;  %s5871_s30 = smov [#allocation4]  }
  0x4a   : > { %v6096_v57 = vld [vmem:[#allocation2 + $0x10] sm:$0xf]  ;;  %5002 = vmatpush3.msk.msra.mxu1 %vm677_vm6, %v579_v56  ;;  %v2430_v63 = vld [vmem:[#allocation2 + $0x14] sm:$0xf]  ;;  %v6140_v5 = vld [vmem:[%s5977_s21 + $0x61] sm:$0xff]  ;;  %s5795_s8 = sshll.u32 %s5871_s30, 4  ;;  %s5796_s8 = int_to_ptr.vmem [resolvable:$false] %s5795_s8 }
  0x4b   : > { %5201 = vmatprep.subr.msk.mxu0 %vm677_vm6, %v6096_v57  ;;  %5004 = vmatmul.mubr.msk.f32.vlgmr.msra.gmra.mrb[0].mxu1 %vm580_vm7, %v548_v60  ;;  %v2820_v3 = vld [vmem:[#allocation2 + $0x18] sm:$0xf]  ;;  %v6151_v6 = vld [vmem:[%s5977_s21 + $0x69] sm:$0xff]  ;;  %v6165_v8 = vld [vmem:[%s5977_s21 + $0x81] sm:$0xff]  ;;  %p5793_p0 = pnand %p5792_p13, %p5954_p4  ;;  %s5797_s10 = scalar_lea.vmem %s5796_s8, 8192 }
  0x4c   : > { %5202 = vmatpush3.msk.msra.mxu0 %vm677_vm6, %v6096_v57  ;;  %5051 = vmatprep.subr.msk.mxu1 %vm677_vm6, %v546_v61  ;;  %v6136_v4 = vld [vmem:[%s5977_s21 + $0x51] sm:$0xff]  ;;  %v6154_v7 = vld [vmem:[%s5977_s21 + $0x79] sm:$0xff]  ;;  %v6167_v9 = vld [vmem:[#allocation2 + $0x8] sm:$0xf]  ;;  %p5798_p2 = scmp.lt.s32.totalorder %s7064_s17, %s5796_s8  ;;  %p5799_p3 = scmp.lt.s32.totalorder %s5797_s10, %s5791_s23 }
  0x4d   : > { %5204 = vmatmul.mubr.msk.f32.vlgmr.msra.gmra.mrb[0].mxu0 %vm580_vm7, %v4373_v62  ;;  %5251 = vmatprep.subr.msk.mxu0 %vm677_vm6, %v2430_v63  ;;  %v6170_v10 = vld [vmem:[%s5977_s21 + $0x91] sm:$0xff]  ;;  %v6183_v11 = vld [vmem:[%s5977_s21 + $0x99] sm:$0xff]  ;;  %v6186_v12 = vld [vmem:[%s5977_s21 + $0xa9] sm:$0xff]  ;;  %p5794_p1 = pneg %p5793_p0 }
  0x4e   : > { %5052 = vmatpush3.msk.msra.mxu1 %vm677_vm6, %v546_v61  ;;  %5252 = vmatpush3.msk.msra.mxu0 %vm677_vm6, %v2430_v63  ;;  %v6197_v14 = vld [vmem:[%s5977_s21 + $0xb1] sm:$0xff]  ;;  %v6200_v15 = vld [vmem:[%s5977_s21 + $0xc1] sm:$0xff]  ;;  %v6211_v16 = vld [vmem:[%s5977_s21 + $0xc9] sm:$0xff]  ;;  %p5800_p5 = por %p5799_p3, %p5798_p2 }
  0x4f   : > { %5006 = vmatprep.mubr.msk.f32.mxu1 %vm580_vm7, %v4372_v59  ;;  %5206 = vmatprep.mubr.msk.f32.mxu0 %vm580_vm7, %v6113_v0  ;;  %v6214_v18 = vld [vmem:[%s5977_s21 + $0x1a] sm:$0xff]  ;;  %v6225_v19 = vld [vmem:[%s5977_s21 + $0x22] sm:$0xff]  ;;  %v6231_v21 = vld [vmem:[%s5977_s21 + $0x32] sm:$0xff] }
  0x50   : > { %5007 = vmatmul.mubr.msk.f32.gmra.mrb[2].mxu1 %vm580_vm7, %v4373_v62  ;;  %5301 = vmatprep.subr.msk.mxu0 %vm677_vm6, %v2820_v3  ;;  %v6228_v20 = vld [vmem:[%s5977_s21 + $0xd9] sm:$0xff]  ;;  %v6242_v23 = vld [vmem:[%s5977_s21 + $0xe1] sm:$0xff]  ;;  %v6251_v24 = vld [vmem:[%s5977_s21 + $0xf1] sm:$0xff]  ;;  %p5801_p6 = pnand %p5800_p5, %p5794_p1 }
  0x51   : > { %5207 = vmatmul.mubr.msk.f32.gmra.mrb[2].mxu0 %vm580_vm7, %v6120_v1  ;;  %5009 = vmatprep.mubr.msk.f32.mxu1 %vm580_vm7, %v6113_v0  ;;  %v6235_v22 = vld [vmem:[#allocation2 + $0x1c] sm:$0xf]  ;;  %7184 = vst [vmem:[#allocation7_spill] sm:$0xff] %v6242_v23  ;;  %7185 = vst [vmem:[#allocation8_spill] sm:$0xff] %v6251_v24  ;;  %v6254_v25 = vld [vmem:[%s5977_s21 + $0x4a] sm:$0xff] }
  0x52   : > { %5209 = vmatprep.mubr.msk.f32.mxu0 %vm580_vm7, %v6126_v2  ;;  %5101 = vmatprep.subr.msk.mxu1 %vm677_vm6, %v6167_v9  ;;  %v6248_v13 = vld [vmem:[%s5977_s21 + $0x3a] sm:$0xff]  ;;  %v6270_v27 = vld [vmem:[%s5977_s21 + $0x52] sm:$0xff]  ;;  %v6273_v28 = vld [vmem:[%s5977_s21 + $0x109] sm:$0xff] }
  0x53   : > { %v6265_v26 = vld [vmem:[%s5977_s21 + $0xf9] sm:$0xff]  ;;  %7187 = vst [vmem:[#allocation10_spill] sm:$0xff] %v6273_v28  ;;  %v6276_v29 = vld [vmem:[%s5977_s21 + $0x62] sm:$0xff]  ;;  %v6285_v17 = vld [vmem:[%s5977_s21 + $0x111] sm:$0xff] }
  0x54   : > { %5010 = vmatmul.mubr.msk.f32.gmra.mrb[4].mxu1 %vm580_vm7, %v6120_v1  ;;  %7186 = vst [vmem:[#allocation9_spill] sm:$0xff] %v6265_v26  ;;  %7188 = vst [vmem:[#allocation11_spill] sm:$0xff] %v6285_v17  ;;  %v6290_v30 = vld [vmem:[%s5977_s21 + $0x6a] sm:$0xff]  ;;  %v6293_v31 = vld [vmem:[%s5977_s21 + $0x121] sm:$0xff] }
  0x55   : > { %5210 = vmatmul.mubr.msk.f32.gmra.mrb[4].mxu0 %vm580_vm7, %v6136_v4  ;;  %5012 = vmatprep.mubr.msk.f32.mxu1 %vm580_vm7, %v6126_v2  ;;  %7189 = vst [vmem:[#allocation12_spill] sm:$0xff] %v6293_v31  ;;  %v6296_v32 = vld [vmem:[%s5977_s21 + $0x7a] sm:$0xff]  ;;  %v6305_v33 = vld [vmem:[%s5977_s21 + $0x129] sm:$0xff]  ;;  %v6316_v36 = vld [vmem:[%s5977_s21 + $0x92] sm:$0xff] }
  0x56   : > { %5212 = vmatprep.mubr.msk.f32.mxu0 %vm580_vm7, %v6140_v5  ;;  %7190 = vst [vmem:[#allocation13_spill] sm:$0xff] %v6305_v33  ;;  %v6310_v34 = vld [vmem:[%s5977_s21 + $0x82] sm:$0xff]  ;;  %v6313_v35 = vld [vmem:[%s5977_s21 + $0x139] sm:$0xff]  ;;  %v6333_v40 = vld [vmem:[%s5977_s21 + $0x151] sm:$0xff] }
  0x57   : > { %7191 = vst [vmem:[#allocation14_spill] sm:$0xff] %v6313_v35  ;;  %v6325_v38 = vld [vmem:[%s5977_s21 + $0x141] sm:$0xff]  ;;  %7193 = vst [vmem:[#allocation16_spill] sm:$0xff] %v6333_v40  ;;  %v6336_v41 = vld [vmem:[%s5977_s21 + $0xaa] sm:$0xff] }
  0x58   : > { %5013 = vmatmul.mubr.msk.f32.gmra.mrb[6].mxu1 %vm580_vm7, %v6136_v4  ;;  %7192 = vst [vmem:[#allocation15_spill] sm:$0xff] %v6325_v38  ;;  %v6330_v39 = vld [vmem:[%s5977_s21 + $0x9a] sm:$0xff]  ;;  %v6350_v43 = vld [vmem:[%s5977_s21 + $0xb2] sm:$0xff]  ;;  %v6353_v37 = vld [vmem:[%s5977_s21 + $0x169] sm:$0xff] }
  0x59   : > { %5213 = vmatmul.mubr.msk.f32.gmra.mrb[6].mxu0 %vm580_vm7, %v6151_v6  ;;  %5015 = vmatprep.mubr.msk.f32.mxu1 %vm580_vm7, %v6140_v5  ;;  %v6345_v42 = vld [vmem:[%s5977_s21 + $0x159] sm:$0xff]  ;;  %7195 = vst [vmem:[#allocation18_spill] sm:$0xff] %v6353_v37  ;;  %v6356_v44 = vld [vmem:[%s5977_s21 + $0xc2] sm:$0xff]  ;;  %v6365_v45 = vld [vmem:[%s5977_s21 + $0x171] sm:$0xff] }
  0x5a   : > { %5215 = vmatprep.mubr.msk.f32.mxu0 %vm580_vm7, %v6154_v7  ;;  %7194 = vst [vmem:[#allocation17_spill] sm:$0xff] %v6345_v42  ;;  %7196 = vst [vmem:[#allocation19_spill] sm:$0xff] %v6365_v45  ;;  %v6370_v46 = vld [vmem:[%s5977_s21 + $0xca] sm:$0xff]  ;;  %v514_v47 = vld [vmem:[%s5977_s21] sm:$0xff] }
  0x5b   : > { %v6374_v48 = vld [vmem:[%s5977_s21 + $0xda] sm:$0xff]  ;;  %v515_v49 = vld [vmem:[%s5977_s21 + $0x8] sm:$0xff]  ;;  %v6391_v52 = vld [vmem:[%s5977_s21 + $0xf2] sm:$0xff] }
  0x5c   : > { %5016 = vmatmul.mubr.msk.f32.gmra.mrb[8].mxu1 %vm580_vm7, %v6151_v6  ;;  %v6385_v50 = vld [vmem:[%s5977_s21 + $0xe2] sm:$0xff]  ;;  %v6388_v51 = vld [vmem:[%s5977_s21 + $0x18] sm:$0xff]  ;;  %v6394_v53 = vld [vmem:[#allocation2 + $0xc] sm:$0xf] }
  0x5d   : > { %5216 = vmatmul.mubr.msk.f32.gmra.mrb[8].mxu0 %vm580_vm7, %v6165_v8  ;;  %5018 = vmatprep.mubr.msk.f32.mxu1 %vm580_vm7, %v6154_v7  ;;  %7197 = vst [vmem:[#allocation20_spill] sm:$0xff] %v6388_v51  ;;  %v6401_v54 = vld [vmem:[%s5977_s21 + $0x20] sm:$0xff]  ;;  %v6411_v56 = vld [vmem:[%s5977_s21 + $0x30] sm:$0xff]  ;;  %v6425_v59 = vld [vmem:[%s5977_s21 + $0x38] sm:$0xff] }
  0x5e   : > { %5218 = vmatprep.mubr.msk.f32.mxu0 %vm580_vm7, %v6170_v10  ;;  %7198 = vst [vmem:[#allocation21_spill] sm:$0xff] %v6401_v54  ;;  %v6408_v55 = vld [vmem:[%s5977_s21 + $0xfa] sm:$0xff]  ;;  %7199 = vst [vmem:[#allocation22_spill] sm:$0xff] %v6411_v56  ;;  %v6414_v58 = vld [vmem:[%s5977_s21 + $0x10a] sm:$0xff] }
  0x5f   : > { %7200 = vst [vmem:[#allocation23_spill] sm:$0xff] %v6425_v59  ;;  %v6430_v60 = vld [vmem:[%s5977_s21 + $0x112] sm:$0xff]  ;;  %v6433_v61 = vld [vmem:[%s5977_s21 + $0x48] sm:$0xff] }
  0x60   : > { %5019 = vmatmul.mubr.msk.f32.gmra.mrb[10].mxu1 %vm580_vm7, %v6165_v8  ;;  %7201 = vst [vmem:[#allocation24_spill] sm:$0xff] %v6433_v61  ;;  %v6436_v62 = vld [vmem:[%s5977_s21 + $0x122] sm:$0xff]  ;;  %v6445_v63 = vld [vmem:[%s5977_s21 + $0x50] sm:$0xff] }
  0x61   : > { %5219 = vmatmul.mubr.msk.f32.gmra.mrb[10].mxu0 %vm580_vm7, %v6183_v11  ;;  %5021 = vmatprep.mubr.msk.f32.mxu1 %vm580_vm7, %v6170_v10  ;;  %7202 = vst [vmem:[#allocation25_spill] sm:$0xff] %v6445_v63 }
  0x62   : > { %5221 = vmatprep.mubr.msk.f32.mxu0 %vm580_vm7, %v6186_v12 }
  0x64   : > { %5022 = vmatmul.mubr.msk.f32.gmra.mrb[12].mxu1 %vm580_vm7, %v6183_v11 }
  0x65   : > { %5222 = vmatmul.mubr.msk.f32.gmra.mrb[12].mxu0 %vm580_vm7, %v6197_v14  ;;  %5024 = vmatprep.mubr.msk.f32.mxu1 %vm580_vm7, %v6186_v12 }
  0x66   : > { %5224 = vmatprep.mubr.msk.f32.mxu0 %vm580_vm7, %v6200_v15 }
  0x68   : > { %5025 = vmatmul.mubr.msk.f32.gmra.mrb[14].mxu1 %vm580_vm7, %v6197_v14 }
  0x69   : > { %5225 = vmatmul.mubr.msk.f32.gmra.mrb[14].mxu0 %vm580_vm7, %v6211_v16  ;;  %5027 = vmatprep.mubr.msk.f32.mxu1 %vm580_vm7, %v6200_v15 }
  0x6a   : > { %5253 = vmatprep.mubr.msk.f32.mxu0 %vm580_vm7, %v6214_v18 }
  0x6c   : > { %5028 = vmatmul.mubr.msk.f32.gmra.mrb[16].mxu1 %vm580_vm7, %v6211_v16 }
  0x6d   : > { %5254 = vmatmul.mubr.msk.f32.vlgmr.msra.gmra.mrb[0].mxu0 %vm580_vm7, %v6225_v19  ;;  %5030 = vmatprep.mubr.msk.f32.mxu1 %vm580_vm7, %v6228_v20 }
  0x6e   : > { %5302 = vmatpush3.msk.msra.mxu0 %vm677_vm6, %v2820_v3  ;;  %5256 = vmatprep.mubr.msk.f32.mxu0 %vm580_vm7, %v6231_v21  ;;  %v6450_v3 = vld [vmem:[%s5977_s21 + $0x12a] sm:$0xff] }
  0x6f   : > { %5351 = vmatprep.subr.msk.mxu0 %vm677_vm6, %v6235_v22 }
  0x70   : > { %5031 = vmatmul.mubr.msk.f32.gmra.mrb[18].mxu1 %vm580_vm7, %v6242_v23  ;;  %v6542_v23 = vld [vmem:[%s5977_s21 + $0xc8] sm:$0xff] }
  0x71   : > { %5257 = vmatmul.mubr.msk.f32.gmra.mrb[2].mxu0 %vm580_vm7, %v6248_v13  ;;  %5033 = vmatprep.mubr.msk.f32.mxu1 %vm580_vm7, %v6251_v24  ;;  %v6530_v24 = vld [vmem:[%s5977_s21 + $0x18a] sm:$0xff] }
  0x72   : > { %5259 = vmatprep.mubr.msk.f32.mxu0 %vm580_vm7, %v6254_v25  ;;  %7213 = vst [vmem:[#allocation36_spill] sm:$0xff] %v6530_v24 }
  0x74   : > { %5034 = vmatmul.mubr.msk.f32.gmra.mrb[20].mxu1 %vm580_vm7, %v6265_v26  ;;  %v6516_v26 = vld [vmem:[%s5977_s21 + $0x182] sm:$0xff] }
  0x75   : > { %5260 = vmatmul.mubr.msk.f32.gmra.mrb[4].mxu0 %vm580_vm7, %v6270_v27  ;;  %5036 = vmatprep.mubr.msk.f32.mxu1 %vm580_vm7, %v6273_v28  ;;  %v6513_v28 = vld [vmem:[%s5977_s21 + $0xa8] sm:$0xff]  ;;  %7211 = vst [vmem:[#allocation34_spill] sm:$0xff] %v6516_v26 }
  0x76   : > { %5262 = vmatprep.mubr.msk.f32.mxu0 %vm580_vm7, %v6276_v29  ;;  %7210 = vst [vmem:[#allocation33_spill] sm:$0xff] %v6513_v28 }
  0x78   : > { %5037 = vmatmul.mubr.msk.f32.gmra.mrb[22].mxu1 %vm580_vm7, %v6285_v17  ;;  %v6510_v17 = vld [vmem:[%s5977_s21 + $0x172] sm:$0xff] }
  0x79   : > { %5263 = vmatmul.mubr.msk.f32.gmra.mrb[6].mxu0 %vm580_vm7, %v6290_v30  ;;  %5039 = vmatprep.mubr.msk.f32.mxu1 %vm580_vm7, %v6293_v31  ;;  %v6505_v31 = vld [vmem:[%s5977_s21 + $0x98] sm:$0xff]  ;;  %7209 = vst [vmem:[#allocation32_spill] sm:$0xff] %v6510_v17 }
  0x7a   : > { %5265 = vmatprep.mubr.msk.f32.mxu0 %vm580_vm7, %v6296_v32  ;;  %7208 = vst [vmem:[#allocation31_spill] sm:$0xff] %v6505_v31 }
  0x7c   : > { %5040 = vmatmul.mubr.msk.f32.gmra.mrb[24].mxu1 %vm580_vm7, %v6305_v33  ;;  %v6496_v33 = vld [vmem:[%s5977_s21 + $0x16a] sm:$0xff] }
  0x7d   : > { %5266 = vmatmul.mubr.msk.f32.gmra.mrb[8].mxu0 %vm580_vm7, %v6310_v34  ;;  %5042 = vmatprep.mubr.msk.f32.mxu1 %vm580_vm7, %v6313_v35  ;;  %v6493_v35 = vld [vmem:[%s5977_s21 + $0x90] sm:$0xff] }
  0x7e   : > { %5268 = vmatprep.mubr.msk.f32.mxu0 %vm580_vm7, %v6316_v36  ;;  %7207 = vst [vmem:[#allocation30_spill] sm:$0xff] %v6493_v35 }
  0x80   : > { %5043 = vmatmul.mubr.msk.f32.gmra.mrb[26].mxu1 %vm580_vm7, %v6325_v38  ;;  %v6490_v38 = vld [vmem:[%s5977_s21 + $0x15a] sm:$0xff] }
  0x81   : > { %5269 = vmatmul.mubr.msk.f32.gmra.mrb[10].mxu0 %vm580_vm7, %v6330_v39  ;;  %5045 = vmatprep.mubr.msk.f32.mxu1 %vm580_vm7, %v6333_v40  ;;  %v6485_v40 = vld [vmem:[%s5977_s21 + $0x80] sm:$0xff] }
  0x82   : > { %5271 = vmatprep.mubr.msk.f32.mxu0 %vm580_vm7, %v6336_v41  ;;  %7206 = vst [vmem:[#allocation29_spill] sm:$0xff] %v6485_v40 }
  0x84   : > { %5046 = vmatmul.mubr.msk.f32.gmra.mrb[28].mxu1 %vm580_vm7, %v6345_v42  ;;  %v6476_v42 = vld [vmem:[%s5977_s21 + $0x152] sm:$0xff] }
  0x85   : > { %5272 = vmatmul.mubr.msk.f32.gmra.mrb[12].mxu0 %vm580_vm7, %v6350_v43  ;;  %5048 = vmatprep.mubr.msk.f32.mxu1 %vm580_vm7, %v6353_v37  ;;  %v6473_v37 = vld [vmem:[%s5977_s21 + $0x78] sm:$0xff] }
  0x86   : > { %5274 = vmatprep.mubr.msk.f32.mxu0 %vm580_vm7, %v6356_v44  ;;  %7205 = vst [vmem:[#allocation28_spill] sm:$0xff] %v6473_v37 }
  0x88   : > { %5049 = vmatmul.mubr.msk.f32.gmra.mrb[30].mxu1 %vm580_vm7, %v6365_v45  ;;  %v6470_v45 = vld [vmem:[%s5977_s21 + $0x142] sm:$0xff] }
  0x89   : > { %5275 = vmatmul.mubr.msk.f32.gmra.mrb[14].mxu0 %vm580_vm7, %v6370_v46  ;;  %5053 = vmatprep.mubr.msk.f32.mxu1 %vm580_vm7, %v514_v47  ;;  %v6456_v47 = vld [vmem:[%s5977_s21 + $0x13a] sm:$0xff] }
  0x8a   : > { %5277 = vmatprep.mubr.msk.f32.mxu0 %vm580_vm7, %v6374_v48 }
  0x8c   : > { %5054 = vmatmul.mubr.msk.f32.vlgmr.msra.gmra.mrb[0].mxu1 %vm580_vm7, %v515_v49  ;;  %v6465_v49 = vld [vmem:[%s5977_s21 + $0x68] sm:$0xff] }
  0x8d   : > { %5278 = vmatmul.mubr.msk.f32.gmra.mrb[16].mxu0 %vm580_vm7, %v6385_v50  ;;  %5102 = vmatpush3.msk.msra.mxu1 %vm677_vm6, %v6167_v9  ;;  %v6453_v9 = vld [vmem:[%s5977_s21 + $0x60] sm:$0xff]  ;;  %7204 = vst [vmem:[#allocation27_spill] sm:$0xff] %v6465_v49 }
  0x8e   : > { %5056 = vmatprep.mubr.msk.f32.mxu1 %vm580_vm7, %v6388_v51  ;;  %5280 = vmatprep.mubr.msk.f32.mxu0 %vm580_vm7, %v6391_v52  ;;  %7203 = vst [vmem:[#allocation26_spill] sm:$0xff] %v6453_v9  ;;  %v6533_v51 = vld [vmem:[%s5977_s21 + $0xc0] sm:$0xff] }
  0x8f   : > { %5151 = vmatprep.subr.msk.mxu1 %vm677_vm6, %v6394_v53  ;;  %7214 = vst [vmem:[#allocation37_spill] sm:$0xff] %v6533_v51 }
  0x90   : > { %5057 = vmatmul.mubr.msk.f32.gmra.mrb[2].mxu1 %vm580_vm7, %v6401_v54  ;;  %v6525_v54 = vld [vmem:[%s5977_s21 + $0xb0] sm:$0xff] }
  0x91   : > { %5281 = vmatmul.mubr.msk.f32.gmra.mrb[18].mxu0 %vm580_vm7, %v6408_v55  ;;  %5059 = vmatprep.mubr.msk.f32.mxu1 %vm580_vm7, %v6411_v56  ;;  %7212 = vst [vmem:[#allocation35_spill] sm:$0xff] %v6525_v54 }
  0x92   : > { %5283 = vmatprep.mubr.msk.f32.mxu0 %vm580_vm7, %v6414_v58 }
  0x94   : > { %5060 = vmatmul.mubr.msk.f32.gmra.mrb[4].mxu1 %vm580_vm7, %v6425_v59 }
  0x95   : > { %5284 = vmatmul.mubr.msk.f32.gmra.mrb[20].mxu0 %vm580_vm7, %v6430_v60  ;;  %5062 = vmatprep.mubr.msk.f32.mxu1 %vm580_vm7, %v6433_v61 }
  0x96   : > { %5286 = vmatprep.mubr.msk.f32.mxu0 %vm580_vm7, %v6436_v62 }
  0x98   : > { %5063 = vmatmul.mubr.msk.f32.gmra.mrb[6].mxu1 %vm580_vm7, %v6445_v63 }
  0x99   : > { %5287 = vmatmul.mubr.msk.f32.gmra.mrb[22].mxu0 %vm580_vm7, %v6450_v3  ;;  %5065 = vmatprep.mubr.msk.f32.mxu1 %vm580_vm7, %v6453_v9 }
  0x9a   : > { %5289 = vmatprep.mubr.msk.f32.mxu0 %vm580_vm7, %v6456_v47 }
  0x9c   : > { %5066 = vmatmul.mubr.msk.f32.gmra.mrb[8].mxu1 %vm580_vm7, %v6465_v49 }
  0x9d   : > { %5290 = vmatmul.mubr.msk.f32.gmra.mrb[24].mxu0 %vm580_vm7, %v6470_v45  ;;  %5068 = vmatprep.mubr.msk.f32.mxu1 %vm580_vm7, %v6473_v37 }
  0x9e   : > { %5292 = vmatprep.mubr.msk.f32.mxu0 %vm580_vm7, %v6476_v42 }
  0xa0   : > { %5069 = vmatmul.mubr.msk.f32.gmra.mrb[10].mxu1 %vm580_vm7, %v6485_v40 }
  0xa1   : > { %5293 = vmatmul.mubr.msk.f32.gmra.mrb[26].mxu0 %vm580_vm7, %v6490_v38  ;;  %5071 = vmatprep.mubr.msk.f32.mxu1 %vm580_vm7, %v6493_v35 }
  0xa2   : > { %5295 = vmatprep.mubr.msk.f32.mxu0 %vm580_vm7, %v6496_v33 }
  0xa4   : > { %5072 = vmatmul.mubr.msk.f32.gmra.mrb[12].mxu1 %vm580_vm7, %v6505_v31 }
  0xa5   : > { %5296 = vmatmul.mubr.msk.f32.gmra.mrb[28].mxu0 %vm580_vm7, %v6510_v17  ;;  %5074 = vmatprep.mubr.msk.f32.mxu1 %vm580_vm7, %v6513_v28  ;;  %v6551_v17 = vld [vmem:[#allocation2 + $0x20] sm:$0xf] }
  0xa6   : > { %5298 = vmatprep.mubr.msk.f32.mxu0 %vm580_vm7, %v6516_v26  ;;  %v6547_v26 = vld [vmem:[%s5977_s21 + $0xd8] sm:$0xff] }
  0xa8   : > { %5075 = vmatmul.mubr.msk.f32.gmra.mrb[14].mxu1 %vm580_vm7, %v6525_v54 }
  0xa9   : > { %5299 = vmatmul.mubr.msk.f32.gmra.mrb[30].mxu0 %vm580_vm7, %v6530_v24  ;;  %5077 = vmatprep.mubr.msk.f32.mxu1 %vm580_vm7, %v6533_v51  ;;  %v6558_v24 = vld [vmem:[%s5977_s21 + $0xe0] sm:$0xff] }
  0xaa   : > { %5303 = vmatprep.mubr.msk.f32.mxu0 %vm580_vm7, %v6411_v56  ;;  %v6565_v56 = vld [vmem:[%s5977_s21 + $0xf0] sm:$0xff] }
  0xac   : > { %5078 = vmatmul.mubr.msk.f32.gmra.mrb[16].mxu1 %vm580_vm7, %v6542_v23 }
  0xad   : > { %5304 = vmatmul.mubr.msk.f32.vlgmr.msra.gmra.mrb[0].mxu0 %vm580_vm7, %v6425_v59  ;;  %5080 = vmatprep.mubr.msk.f32.mxu1 %vm580_vm7, %v6547_v26  ;;  %v6595_v59 = vld [vmem:[%s5977_s21 + $0x120] sm:$0xff] }
  0xae   : > { %5352 = vmatpush3.msk.msra.mxu0 %vm677_vm6, %v6235_v22  ;;  %5306 = vmatprep.mubr.msk.f32.mxu0 %vm580_vm7, %v6433_v61  ;;  %v6576_v22 = vld [vmem:[%s5977_s21 + $0xf8] sm:$0xff]  ;;  %v6581_v61 = vld [vmem:[%s5977_s21 + $0x108] sm:$0xff] }
  0xaf   : > { %5401 = vmatprep.subr.msk.mxu0 %vm677_vm6, %v6551_v17 }
  0xb0   : > { %5081 = vmatmul.mubr.msk.f32.gmra.mrb[18].mxu1 %vm580_vm7, %v6558_v24 }
  0xb1   : > { %5307 = vmatmul.mubr.msk.f32.gmra.mrb[2].mxu0 %vm580_vm7, %v6445_v63  ;;  %5083 = vmatprep.mubr.msk.f32.mxu1 %vm580_vm7, %v6565_v56  ;;  %v6590_v63 = vld [vmem:[%s5977_s21 + $0x110] sm:$0xff] }
  0xb2   : > { %5309 = vmatprep.mubr.msk.f32.mxu0 %vm580_vm7, %v6453_v9  ;;  %v6609_v9 = vld [vmem:[%s5977_s21 + $0x138] sm:$0xff] }
  0xb4   : > { %5084 = vmatmul.mubr.msk.f32.gmra.mrb[20].mxu1 %vm580_vm7, %v6576_v22 }
  0xb5   : > { %5310 = vmatmul.mubr.msk.f32.gmra.mrb[4].mxu0 %vm580_vm7, %v6465_v49  ;;  %5086 = vmatprep.mubr.msk.f32.mxu1 %vm580_vm7, %v6581_v61  ;;  %v6604_v49 = vld [vmem:[%s5977_s21 + $0x128] sm:$0xff] }
  0xb6   : > { %5312 = vmatprep.mubr.msk.f32.mxu0 %vm580_vm7, %v6473_v37  ;;  %v6623_v37 = vld [vmem:[%s5977_s21 + $0x150] sm:$0xff] }
  0xb8   : > { %5087 = vmatmul.mubr.msk.f32.gmra.mrb[22].mxu1 %vm580_vm7, %v6590_v63 }
  0xb9   : > { %5313 = vmatmul.mubr.msk.f32.gmra.mrb[6].mxu0 %vm580_vm7, %v6485_v40  ;;  %5089 = vmatprep.mubr.msk.f32.mxu1 %vm580_vm7, %v6595_v59  ;;  %v6618_v40 = vld [vmem:[%s5977_s21 + $0x140] sm:$0xff] }
  0xba   : > { %5315 = vmatprep.mubr.msk.f32.mxu0 %vm580_vm7, %v6493_v35  ;;  %v6637_v35 = vld [vmem:[%s5977_s21 + $0x168] sm:$0xff] }
  0xbc   : > { %5090 = vmatmul.mubr.msk.f32.gmra.mrb[24].mxu1 %vm580_vm7, %v6604_v49 }
  0xbd   : > { %5316 = vmatmul.mubr.msk.f32.gmra.mrb[8].mxu0 %vm580_vm7, %v6505_v31  ;;  %5092 = vmatprep.mubr.msk.f32.mxu1 %vm580_vm7, %v6609_v9  ;;  %v6632_v31 = vld [vmem:[%s5977_s21 + $0x158] sm:$0xff] }
  0xbe   : > { %5318 = vmatprep.mubr.msk.f32.mxu0 %vm580_vm7, %v6513_v28  ;;  %v1230_v28 = vld [vmem:[%s5977_s21 + $0x2] sm:$0xff] }
  0xc0   : > { %5093 = vmatmul.mubr.msk.f32.gmra.mrb[26].mxu1 %vm580_vm7, %v6618_v40 }
  0xc1   : > { %5319 = vmatmul.mubr.msk.f32.gmra.mrb[10].mxu0 %vm580_vm7, %v6525_v54  ;;  %5095 = vmatprep.mubr.msk.f32.mxu1 %vm580_vm7, %v6623_v37  ;;  %v6646_v54 = vld [vmem:[%s5977_s21 + $0x170] sm:$0xff] }
  0xc2   : > { %5321 = vmatprep.mubr.msk.f32.mxu0 %vm580_vm7, %v6533_v51  ;;  %v1231_v51 = vld [vmem:[%s5977_s21 + $0xa] sm:$0xff] }
  0xc4   : > { %5096 = vmatmul.mubr.msk.f32.gmra.mrb[28].mxu1 %vm580_vm7, %v6632_v31 }
  0xc5   : > { %5322 = vmatmul.mubr.msk.f32.gmra.mrb[12].mxu0 %vm580_vm7, %v6542_v23  ;;  %5098 = vmatprep.mubr.msk.f32.mxu1 %vm580_vm7, %v6637_v35 }
  0xc6   : > { %5324 = vmatprep.mubr.msk.f32.mxu0 %vm580_vm7, %v6547_v26 }
  0xc8   : > { %5099 = vmatmul.mubr.msk.f32.gmra.mrb[30].mxu1 %vm580_vm7, %v6646_v54 }
  0xc9   : > { %5325 = vmatmul.mubr.msk.f32.gmra.mrb[14].mxu0 %vm580_vm7, %v6558_v24  ;;  %5103 = vmatprep.mubr.msk.f32.mxu1 %vm580_vm7, %v1230_v28  ;;  %v4532_v28 = vld [vmem:[%s5977_s21 + $0x198] sm:$0xff] }
  0xca   : > { %5327 = vmatprep.mubr.msk.f32.mxu0 %vm580_vm7, %v6565_v56 }
  0xcc   : > { %5104 = vmatmul.mubr.msk.f32.vlgmr.msra.gmra.mrb[0].mxu1 %vm580_vm7, %v1231_v51  ;;  %v4533_v51 = vld [vmem:[%s5977_s21 + $0x1a0] sm:$0xff] }
  0xcd   : > { %5328 = vmatmul.mubr.msk.f32.gmra.mrb[16].mxu0 %vm580_vm7, %v6576_v22  ;;  %5152 = vmatpush3.msk.msra.mxu1 %vm677_vm6, %v6394_v53  ;;  %v7231_v53 = vld [vmem:[#allocation27_spill] sm:$0xff] }
  0xce   : > { %5106 = vmatprep.mubr.msk.f32.mxu1 %vm580_vm7, %v6214_v18  ;;  %5330 = vmatprep.mubr.msk.f32.mxu0 %vm580_vm7, %v6581_v61  ;;  %v6703_v18 = vld [vmem:[%s5977_s21 + $0x180] sm:$0xff] }
  0xcf   : > { %5451 = vmatprep.subr.msk.mxu1 %vm677_vm6, %v6096_v57 }
  0xd0   : > { %5107 = vmatmul.mubr.msk.f32.gmra.mrb[2].mxu1 %vm580_vm7, %v6225_v19  ;;  %v6714_v19 = vld [vmem:[%s5977_s21 + $0x188] sm:$0xff] }
  0xd1   : > { %5331 = vmatmul.mubr.msk.f32.gmra.mrb[18].mxu0 %vm580_vm7, %v6590_v63  ;;  %5109 = vmatprep.mubr.msk.f32.mxu1 %vm580_vm7, %v6231_v21 }
  0xd2   : > { %5333 = vmatprep.mubr.msk.f32.mxu0 %vm580_vm7, %v6595_v59 }
  0xd4   : > { %5110 = vmatmul.mubr.msk.f32.gmra.mrb[4].mxu1 %vm580_vm7, %v6248_v13 }
  0xd5   : > { %5334 = vmatmul.mubr.msk.f32.gmra.mrb[20].mxu0 %vm580_vm7, %v6604_v49  ;;  %5112 = vmatprep.mubr.msk.f32.mxu1 %vm580_vm7, %v6254_v25 }
  0xd6   : > { %5336 = vmatprep.mubr.msk.f32.mxu0 %vm580_vm7, %v6609_v9 }
  0xd8   : > { %5113 = vmatmul.mubr.msk.f32.gmra.mrb[6].mxu1 %vm580_vm7, %v6270_v27 }
  0xd9   : > { %5337 = vmatmul.mubr.msk.f32.gmra.mrb[22].mxu0 %vm580_vm7, %v6618_v40  ;;  %5115 = vmatprep.mubr.msk.f32.mxu1 %vm580_vm7, %v6276_v29 }
  0xda   : > { %5339 = vmatprep.mubr.msk.f32.mxu0 %vm580_vm7, %v6623_v37 }
  0xdc   : > { %5116 = vmatmul.mubr.msk.f32.gmra.mrb[8].mxu1 %vm580_vm7, %v6290_v30 }
  0xdd   : > { %5340 = vmatmul.mubr.msk.f32.gmra.mrb[24].mxu0 %vm580_vm7, %v6632_v31  ;;  %5118 = vmatprep.mubr.msk.f32.mxu1 %vm580_vm7, %v6296_v32 }
  0xde   : > { %5342 = vmatprep.mubr.msk.f32.mxu0 %vm580_vm7, %v6637_v35 }
  0xe0   : > { %5119 = vmatmul.mubr.msk.f32.gmra.mrb[10].mxu1 %vm580_vm7, %v6310_v34 }
  0xe1   : > { %5343 = vmatmul.mubr.msk.f32.gmra.mrb[26].mxu0 %vm580_vm7, %v6646_v54  ;;  %5121 = vmatprep.mubr.msk.f32.mxu1 %vm580_vm7, %v6316_v36 }
  0xe2   : > { %5345 = vmatprep.mubr.msk.f32.mxu0 %vm580_vm7, %v6703_v18 }
  0xe4   : > { %5122 = vmatmul.mubr.msk.f32.gmra.mrb[12].mxu1 %vm580_vm7, %v6330_v39 }
  0xe5   : > { %5346 = vmatmul.mubr.msk.f32.gmra.mrb[28].mxu0 %vm580_vm7, %v6714_v19  ;;  %5124 = vmatprep.mubr.msk.f32.mxu1 %vm580_vm7, %v6336_v41 }
  0xe6   : > { %5348 = vmatprep.mubr.msk.f32.mxu0 %vm580_vm7, %v4532_v28  ;;  %v7232_v28 = vld [vmem:[#allocation15_spill] sm:$0xff] }
  0xe8   : > { %5125 = vmatmul.mubr.msk.f32.gmra.mrb[14].mxu1 %vm580_vm7, %v6350_v43 }
  0xe9   : > { %5349 = vmatmul.mubr.msk.f32.gmra.mrb[30].mxu0 %vm580_vm7, %v4533_v51  ;;  %5127 = vmatprep.mubr.msk.f32.mxu1 %vm580_vm7, %v6356_v44  ;;  %v7233_v51 = vld [vmem:[#allocation28_spill] sm:$0xff] }
  0xea   : > { %5353 = vmatprep.mubr.msk.f32.mxu0 %vm580_vm7, %v6113_v0  ;;  %v7215_v0 = vld [vmem:[#allocation32_spill] sm:$0xff] }
  0xec   : > { %5128 = vmatmul.mubr.msk.f32.gmra.mrb[16].mxu1 %vm580_vm7, %v6370_v46 }
  0xed   : > { %5354 = vmatmul.mubr.msk.f32.vlgmr.msra.gmra.mrb[0].mxu0 %vm580_vm7, %v6120_v1  ;;  %5130 = vmatprep.mubr.msk.f32.mxu1 %vm580_vm7, %v6374_v48  ;;  %v7216_v1 = vld [vmem:[#allocation7_spill] sm:$0xff] }
  0xee   : > { %5402 = vmatpush3.msk.msra.mxu0 %vm677_vm6, %v6551_v17  ;;  %5356 = vmatprep.mubr.msk.f32.mxu0 %vm580_vm7, %v6126_v2  ;;  %v7217_v2 = vld [vmem:[#allocation20_spill] sm:$0xff]  ;;  %v7230_v17 = vld [vmem:[#allocation14_spill] sm:$0xff] }
  0xf0   : > { %5131 = vmatmul.mubr.msk.f32.gmra.mrb[18].mxu1 %vm580_vm7, %v6385_v50 }
  0xf1   : > { %5357 = vmatmul.mubr.msk.f32.gmra.mrb[2].mxu0 %vm580_vm7, %v6136_v4  ;;  %5133 = vmatprep.mubr.msk.f32.mxu1 %vm580_vm7, %v6391_v52  ;;  %v7218_v4 = vld [vmem:[#allocation8_spill] sm:$0xff] }
  0xf2   : > { %5359 = vmatprep.mubr.msk.f32.mxu0 %vm580_vm7, %v6140_v5  ;;  %v7219_v5 = vld [vmem:[#allocation21_spill] sm:$0xff] }
  0xf4   : > { %5134 = vmatmul.mubr.msk.f32.gmra.mrb[20].mxu1 %vm580_vm7, %v6408_v55 }
  0xf5   : > { %5360 = vmatmul.mubr.msk.f32.gmra.mrb[4].mxu0 %vm580_vm7, %v6151_v6  ;;  %5136 = vmatprep.mubr.msk.f32.mxu1 %vm580_vm7, %v6414_v58  ;;  %v7220_v6 = vld [vmem:[#allocation9_spill] sm:$0xff] }
  0xf6   : > { %5362 = vmatprep.mubr.msk.f32.mxu0 %vm580_vm7, %v6154_v7  ;;  %v7221_v7 = vld [vmem:[#allocation22_spill] sm:$0xff] }
  0xf8   : > { %5137 = vmatmul.mubr.msk.f32.gmra.mrb[22].mxu1 %vm580_vm7, %v6430_v60 }
  0xf9   : > { %5363 = vmatmul.mubr.msk.f32.gmra.mrb[6].mxu0 %vm580_vm7, %v6165_v8  ;;  %5139 = vmatprep.mubr.msk.f32.mxu1 %vm580_vm7, %v6436_v62  ;;  %v7222_v8 = vld [vmem:[#allocation10_spill] sm:$0xff] }
  0xfa   : > { %5365 = vmatprep.mubr.msk.f32.mxu0 %vm580_vm7, %v6170_v10  ;;  %v7223_v10 = vld [vmem:[#allocation23_spill] sm:$0xff] }
  0xfc   : > { %5140 = vmatmul.mubr.msk.f32.gmra.mrb[24].mxu1 %vm580_vm7, %v6450_v3 }
  0xfd   : > { %5366 = vmatmul.mubr.msk.f32.gmra.mrb[8].mxu0 %vm580_vm7, %v6183_v11  ;;  %5142 = vmatprep.mubr.msk.f32.mxu1 %vm580_vm7, %v6456_v47  ;;  %v7224_v11 = vld [vmem:[#allocation11_spill] sm:$0xff] }
  0xfe   : > { %5368 = vmatprep.mubr.msk.f32.mxu0 %vm580_vm7, %v6186_v12  ;;  %v7225_v12 = vld [vmem:[#allocation24_spill] sm:$0xff] }
 0x100   : > { %5143 = vmatmul.mubr.msk.f32.gmra.mrb[26].mxu1 %vm580_vm7, %v6470_v45 }
 0x101   : > { %5369 = vmatmul.mubr.msk.f32.gmra.mrb[10].mxu0 %vm580_vm7, %v6197_v14  ;;  %5145 = vmatprep.mubr.msk.f32.mxu1 %vm580_vm7, %v6476_v42  ;;  %v7226_v14 = vld [vmem:[#allocation12_spill] sm:$0xff] }
 0x102   : > { %5371 = vmatprep.mubr.msk.f32.mxu0 %vm580_vm7, %v6200_v15  ;;  %v7228_v15 = vld [vmem:[#allocation13_spill] sm:$0xff] }
 0x104   : > { %5146 = vmatmul.mubr.msk.f32.gmra.mrb[28].mxu1 %vm580_vm7, %v6490_v38 }
 0x105   : > { %5372 = vmatmul.mubr.msk.f32.gmra.mrb[12].mxu0 %vm580_vm7, %v6211_v16  ;;  %5148 = vmatprep.mubr.msk.f32.mxu1 %vm580_vm7, %v6496_v33  ;;  %v7229_v16 = vld [vmem:[#allocation26_spill] sm:$0xff] }
 0x106   : > { %5374 = vmatprep.mubr.msk.f32.mxu0 %vm580_vm7, %v6228_v20 }
 0x108   : > { %5149 = vmatmul.mubr.msk.f32.gmra.mrb[30].mxu1 %vm580_vm7, %v7215_v0  ;;  %v7242_v0 = vld [vmem:[#allocation35_spill] sm:$0xff] }
 0x109   : > { %5375 = vmatmul.mubr.msk.f32.gmra.mrb[14].mxu0 %vm580_vm7, %v7216_v1  ;;  %5153 = vmatprep.mubr.msk.f32.mxu1 %vm580_vm7, %v7217_v2  ;;  %v7234_v2 = vld [vmem:[#allocation16_spill] sm:$0xff] }
 0x10a   : > { %5377 = vmatprep.mubr.msk.f32.mxu0 %vm580_vm7, %v7218_v4 }
 0x10c   : > { %5154 = vmatmul.mubr.msk.f32.vlgmr.msra.gmra.mrb[0].mxu1 %vm580_vm7, %v7219_v5  ;;  %v7235_v5 = vld [vmem:[#allocation29_spill] sm:$0xff] }
 0x10d   : > { %5378 = vmatmul.mubr.msk.f32.gmra.mrb[16].mxu0 %vm580_vm7, %v7220_v6  ;;  %5452 = vmatpush3.msk.msra.mxu1 %vm677_vm6, %v6096_v57  ;;  %v7227_v57 = vld [vmem:[#allocation25_spill] sm:$0xff] }
 0x10e   : > { %5156 = vmatprep.mubr.msk.f32.mxu1 %vm580_vm7, %v7221_v7  ;;  %5380 = vmatprep.mubr.msk.f32.mxu0 %vm580_vm7, %v7222_v8  ;;  %v7236_v7 = vld [vmem:[#allocation17_spill] sm:$0xff] }
 0x110   : > { %5157 = vmatmul.mubr.msk.f32.gmra.mrb[2].mxu1 %vm580_vm7, %v7223_v10  ;;  %v7237_v10 = vld [vmem:[#allocation30_spill] sm:$0xff] }
 0x111   : > { %5381 = vmatmul.mubr.msk.f32.gmra.mrb[18].mxu0 %vm580_vm7, %v7224_v11  ;;  %5159 = vmatprep.mubr.msk.f32.mxu1 %vm580_vm7, %v7225_v12  ;;  %v7238_v12 = vld [vmem:[#allocation18_spill] sm:$0xff] }
 0x112   : > { %5383 = vmatprep.mubr.msk.f32.mxu0 %vm580_vm7, %v7226_v14 }
 0x114   : > { %5160 = vmatmul.mubr.msk.f32.gmra.mrb[4].mxu1 %vm580_vm7, %v7227_v57  ;;  %v6841_v57 = vld [vmem:[%s5977_s21 + $0x181] sm:$0xff] }
 0x115   : > { %5384 = vmatmul.mubr.msk.f32.gmra.mrb[20].mxu0 %vm580_vm7, %v7228_v15  ;;  %5162 = vmatprep.mubr.msk.f32.mxu1 %vm580_vm7, %v7229_v16  ;;  %v7239_v16 = vld [vmem:[#allocation31_spill] sm:$0xff] }
 0x116   : > { %5386 = vmatprep.mubr.msk.f32.mxu0 %vm580_vm7, %v7230_v17 }
 0x118   : > { %5163 = vmatmul.mubr.msk.f32.gmra.mrb[6].mxu1 %vm580_vm7, %v7231_v53  ;;  %v7240_v53 = vld [vmem:[#allocation19_spill] sm:$0xff] }
 0x119   : > { %5387 = vmatmul.mubr.msk.f32.gmra.mrb[22].mxu0 %vm580_vm7, %v7232_v28  ;;  %5165 = vmatprep.mubr.msk.f32.mxu1 %vm580_vm7, %v7233_v51  ;;  %v7241_v51 = vld [vmem:[#allocation33_spill] sm:$0xff] }
 0x11a   : > { %5389 = vmatprep.mubr.msk.f32.mxu0 %vm580_vm7, %v7234_v2 }
 0x11c   : > { %5166 = vmatmul.mubr.msk.f32.gmra.mrb[8].mxu1 %vm580_vm7, %v7235_v5  ;;  %v6852_v5 = vld [vmem:[%s5977_s21 + $0x189] sm:$0xff] }
 0x11d   : > { %5390 = vmatmul.mubr.msk.f32.gmra.mrb[24].mxu0 %vm580_vm7, %v7236_v7  ;;  %5168 = vmatprep.mubr.msk.f32.mxu1 %vm580_vm7, %v7237_v10  ;;  %v4597_v10 = vld [vmem:[%s5977_s21 + $0x199] sm:$0xff] }
 0x11e   : > { %5392 = vmatprep.mubr.msk.f32.mxu0 %vm580_vm7, %v7238_v12  ;;  %v7243_v12 = vld [vmem:[#allocation37_spill] sm:$0xff] }
 0x120   : > { %5169 = vmatmul.mubr.msk.f32.gmra.mrb[10].mxu1 %vm580_vm7, %v7239_v16  ;;  %v4598_v16 = vld [vmem:[%s5977_s21 + $0x1a1] sm:$0xff] }
 0x121   : > { %5393 = vmatmul.mubr.msk.f32.gmra.mrb[26].mxu0 %vm580_vm7, %v7240_v53  ;;  %5171 = vmatprep.mubr.msk.f32.mxu1 %vm580_vm7, %v7241_v51 }
 0x122   : > { %5395 = vmatprep.mubr.msk.f32.mxu0 %vm580_vm7, %v6841_v57 }
 0x124   : > { %5172 = vmatmul.mubr.msk.f32.gmra.mrb[12].mxu1 %vm580_vm7, %v7242_v0 }
 0x125   : > { %5396 = vmatmul.mubr.msk.f32.gmra.mrb[28].mxu0 %vm580_vm7, %v6852_v5  ;;  %5174 = vmatprep.mubr.msk.f32.mxu1 %vm580_vm7, %v7243_v12 }
 0x126   : > { %5398 = vmatprep.mubr.msk.f32.mxu0 %vm580_vm7, %v4597_v10 }
 0x128   : > { %5175 = vmatmul.mubr.msk.f32.gmra.mrb[14].mxu1 %vm580_vm7, %v6542_v23  ;;  %v7246_v23 = vld [vmem:[#allocation34_spill] sm:$0xff] }
 0x129   : > { %5399 = vmatmul.mubr.msk.f32.gmra.mrb[30].mxu0 %vm580_vm7, %v4598_v16  ;;  %5177 = vmatprep.mubr.msk.f32.mxu1 %vm580_vm7, %v6547_v26 }
 0x12a   : > { %5403 = vmatprep.mubr.msk.f32.mxu0 %vm580_vm7, %v6231_v21  ;;  %v7245_v21 = vld [vmem:[#allocation18_spill] sm:$0xff] }
 0x12c   : > { %5178 = vmatmul.mubr.msk.f32.gmra.mrb[16].mxu1 %vm580_vm7, %v6558_v24  ;;  %v7247_v24 = vld [vmem:[#allocation36_spill] sm:$0xff] }
 0x12d   : > { %5404 = vmatmul.mubr.msk.f32.vlgmr.msra.gmra.mrb[0].mxu0 %vm580_vm7, %v6248_v13  ;;  %5180 = vmatprep.mubr.msk.f32.mxu1 %vm580_vm7, %v6565_v56  ;;  %v4662_v13 = vld [vmem:[%s5977_s21 + $0x19a] sm:$0xff] }
 0x12e   : > { %5406 = vmatprep.mubr.msk.f32.mxu0 %vm580_vm7, %v6254_v25  ;;  %v4663_v25 = vld [vmem:[%s5977_s21 + $0x1a2] sm:$0xff]  ;;  %s4703_s21 = sshll.u32 %s5861_s27, 12  ;;  %s7071_s27 = scalar_lea.sflag [#allocation5], %s355_s15 }
 0x12f   : > { %s7062_s20 = scalar_lea.hbm %s7124_s7, %s4703_s21 }
 0x130   : > { %5181 = vmatmul.mubr.msk.f32.gmra.mrb[18].mxu1 %vm580_vm7, %v6576_v22 }
 0x131   : > { %5407 = vmatmul.mubr.msk.f32.gmra.mrb[2].mxu0 %vm580_vm7, %v6270_v27  ;;  %5183 = vmatprep.mubr.msk.f32.mxu1 %vm580_vm7, %v6581_v61 }
 0x132   : > { %5409 = vmatprep.mubr.msk.f32.mxu0 %vm580_vm7, %v6276_v29 }
 0x134   : > { %5184 = vmatmul.mubr.msk.f32.gmra.mrb[20].mxu1 %vm580_vm7, %v6590_v63 }
 0x135   : > { %5410 = vmatmul.mubr.msk.f32.gmra.mrb[4].mxu0 %vm580_vm7, %v6290_v30  ;;  %5186 = vmatprep.mubr.msk.f32.mxu1 %vm580_vm7, %v6595_v59 }
 0x136   : > { %5412 = vmatprep.mubr.msk.f32.mxu0 %vm580_vm7, %v6296_v32 }
 0x138   : > { %5187 = vmatmul.mubr.msk.f32.gmra.mrb[22].mxu1 %vm580_vm7, %v6604_v49 }
 0x139   : > { %5413 = vmatmul.mubr.msk.f32.gmra.mrb[6].mxu0 %vm580_vm7, %v6310_v34  ;;  %5189 = vmatprep.mubr.msk.f32.mxu1 %vm580_vm7, %v6609_v9 }
 0x13a   : > { %5415 = vmatprep.mubr.msk.f32.mxu0 %vm580_vm7, %v6316_v36 }
 0x13c   : > { %5190 = vmatmul.mubr.msk.f32.gmra.mrb[24].mxu1 %vm580_vm7, %v6618_v40 }
 0x13d   : > { %5416 = vmatmul.mubr.msk.f32.gmra.mrb[8].mxu0 %vm580_vm7, %v6330_v39  ;;  %5192 = vmatprep.mubr.msk.f32.mxu1 %vm580_vm7, %v6623_v37 }
 0x13e   : > { %5418 = vmatprep.mubr.msk.f32.mxu0 %vm580_vm7, %v6336_v41 }
 0x140   : > { %5193 = vmatmul.mubr.msk.f32.gmra.mrb[26].mxu1 %vm580_vm7, %v6632_v31 }
 0x141   : > { %5419 = vmatmul.mubr.msk.f32.gmra.mrb[10].mxu0 %vm580_vm7, %v6350_v43  ;;  %5195 = vmatprep.mubr.msk.f32.mxu1 %vm580_vm7, %v6637_v35 }
 0x142   : > { %5421 = vmatprep.mubr.msk.f32.mxu0 %vm580_vm7, %v6356_v44  ;;  %v6994_v44 = vld [vmem:[#allocation3] ss:$0 sm:$0xff] }
 0x144   : > { %5196 = vmatmul.mubr.msk.f32.gmra.mrb[28].mxu1 %vm580_vm7, %v6646_v54 }
 0x145   : > { %5422 = vmatmul.mubr.msk.f32.gmra.mrb[12].mxu0 %vm580_vm7, %v6370_v46  ;;  %5198 = vmatprep.mubr.msk.f32.mxu1 %vm580_vm7, %v6703_v18 }
 0x146   : > { %5424 = vmatprep.mubr.msk.f32.mxu0 %vm580_vm7, %v6374_v48 }
 0x148   : > { %5199 = vmatmul.mubr.msk.f32.gmra.mrb[30].mxu1 %vm580_vm7, %v6714_v19 }
 0x149   : > { %5425 = vmatmul.mubr.msk.f32.gmra.mrb[14].mxu0 %vm580_vm7, %v6385_v50  ;;  %5227 = vmatprep.mubr.msk.f32.mxu1 %vm580_vm7, %v6228_v20  ;;  %v7244_v20 = vld [vmem:[#allocation32_spill] sm:$0xff] }
 0x14a   : > { %5427 = vmatprep.mubr.msk.f32.mxu0 %vm580_vm7, %v6391_v52 }
 0x14c   : > { %5228 = vmatmul.mubr.msk.f32.vlgmr.msra.gmra.mrb[16].mxu1 %vm580_vm7, %v7216_v1 }
 0x14d   : > { %5428 = vmatmul.mubr.msk.f32.gmra.mrb[16].mxu0 %vm580_vm7, %v6408_v55  ;;  %5230 = vmatprep.mubr.msk.f32.mxu1 %vm580_vm7, %v7218_v4 }
 0x14e   : > { %5430 = vmatprep.mubr.msk.f32.mxu0 %vm580_vm7, %v6414_v58 }
 0x150   : > { %5231 = vmatmul.mubr.msk.f32.gmra.mrb[18].mxu1 %vm580_vm7, %v7220_v6 }
 0x151   : > { %5431 = vmatmul.mubr.msk.f32.gmra.mrb[18].mxu0 %vm580_vm7, %v6430_v60  ;;  %5233 = vmatprep.mubr.msk.f32.mxu1 %vm580_vm7, %v7222_v8 }
 0x152   : > { %5433 = vmatprep.mubr.msk.f32.mxu0 %vm580_vm7, %v6436_v62 }
 0x154   : > { %5234 = vmatmul.mubr.msk.f32.gmra.mrb[20].mxu1 %vm580_vm7, %v7224_v11 }
 0x155   : > { %5434 = vmatmul.mubr.msk.f32.gmra.mrb[20].mxu0 %vm580_vm7, %v6450_v3  ;;  %5236 = vmatprep.mubr.msk.f32.mxu1 %vm580_vm7, %v7226_v14 }
 0x156   : > { %5436 = vmatprep.mubr.msk.f32.mxu0 %vm580_vm7, %v6456_v47 }
 0x158   : > { %5237 = vmatmul.mubr.msk.f32.gmra.mrb[22].mxu1 %vm580_vm7, %v7228_v15 }
 0x159   : > { %5437 = vmatmul.mubr.msk.f32.gmra.mrb[22].mxu0 %vm580_vm7, %v6470_v45  ;;  %5239 = vmatprep.mubr.msk.f32.mxu1 %vm580_vm7, %v7230_v17 }
 0x15a   : > { %5439 = vmatprep.mubr.msk.f32.mxu0 %vm580_vm7, %v6476_v42 }
 0x15c   : > { %5240 = vmatmul.mubr.msk.f32.gmra.mrb[24].mxu1 %vm580_vm7, %v7232_v28 }
 0x15d   : > { %5440 = vmatmul.mubr.msk.f32.gmra.mrb[24].mxu0 %vm580_vm7, %v6490_v38  ;;  %5242 = vmatprep.mubr.msk.f32.mxu1 %vm580_vm7, %v7234_v2 }
 0x15e   : > { %5442 = vmatprep.mubr.msk.f32.mxu0 %vm580_vm7, %v6496_v33 }
 0x160   : > { %5243 = vmatmul.mubr.msk.f32.gmra.mrb[26].mxu1 %vm580_vm7, %v7236_v7 }
 0x161   : > { %5443 = vmatmul.mubr.msk.f32.gmra.mrb[26].mxu0 %vm580_vm7, %v7244_v20  ;;  %5245 = vmatprep.mubr.msk.f32.mxu1 %vm580_vm7, %v7245_v21 }
 0x162   : > { %5445 = vmatprep.mubr.msk.f32.mxu0 %vm580_vm7, %v7246_v23 }
 0x164   : > { %5246 = vmatmul.mubr.msk.f32.gmra.mrb[28].mxu1 %vm580_vm7, %v7240_v53 }
 0x165   : > { %5446 = vmatmul.mubr.msk.f32.gmra.mrb[28].mxu0 %vm580_vm7, %v7247_v24  ;;  %5248 = vmatprep.mubr.msk.f32.mxu1 %vm580_vm7, %v6841_v57 }
 0x166   : > { %5448 = vmatprep.mubr.msk.f32.mxu0 %vm580_vm7, %v4662_v13 }
 0x168   : > { %5249 = vmatmul.mubr.msk.f32.gmra.mrb[30].mxu1 %vm580_vm7, %v6852_v5 }
 0x169   : > { %5449 = vmatmul.mubr.msk.f32.gmra.mrb[30].mxu0 %vm580_vm7, %v4663_v25 }
 0x1df   : > { %v5155_v26 = vpop.f32.mrb[0].mxu1 }
 0x1e0   : > { %v1818_v27 = vpop.f32.mrb[1].mxu1 }
 0x1e3   : > { %v5158_v29 = vpop.f32.mrb[2].mxu1 }
 0x1e4   : > { %v1828_v30 = vpop.f32.mrb[3].mxu1 }
 0x1e7   : > { %v5161_v31 = vpop.f32.mrb[4].mxu1 }
 0x1e8   : > { %v1838_v32 = vpop.f32.mrb[5].mxu1 }
 0x1eb   : > { %v5164_v33 = vpop.f32.mrb[6].mxu1 }
 0x1ec   : > { %v1848_v34 = vpop.f32.mrb[7].mxu1 }
 0x1ef   : > { %v5167_v35 = vpop.f32.mrb[8].mxu1 }
 0x1f0   : > { %v1858_v36 = vpop.f32.mrb[9].mxu1 }
 0x1f3   : > { %v5170_v38 = vpop.f32.mrb[10].mxu1 }
 0x1f4   : > { %v1868_v39 = vpop.f32.mrb[11].mxu1 }
 0x1f7   : > { %v5173_v40 = vpop.f32.mrb[12].mxu1 }
 0x1f8   : > { %v1878_v41 = vpop.f32.mrb[13].mxu1 }
 0x1fb   : > { %v5176_v42 = vpop.f32.mrb[14].mxu1 }
 0x1fc   : > { %v1888_v43 = vpop.f32.mrb[15].mxu1 }
 0x200   : > { %v5405_v37 = vpop.f32.mrb[0].mxu0 }
 0x201   : > { %v5453_v45 = vadd.f32 %v5405_v37, %v5155_v26  ;;  %v3764_v46 = vpop.f32.mrb[1].mxu0 }
 0x202   : > { %v5454_v48 = vadd.f32 %v3764_v46, %v1818_v27 }
 0x203   : > { %v3963_v50 = vadd.f32 %v5453_v45, %v6994_v44 }
 0x204   : > { %v3962_v52 = vadd.f32 %v5454_v48, %v6994_v44  ;;  %v5408_v54 = vpop.f32.mrb[2].mxu0 }
 0x205   : > { %3995 = vst [vmem:[%s5979_s22 + $0x8] sm:$0xff] %v3963_v50  ;;  %v5455_v55 = vadd.f32 %v5408_v54, %v5158_v29  ;;  %v3774_v56 = vpop.f32.mrb[3].mxu0 }
 0x206   : > { %3994 = vst [vmem:[%s5979_s22] sm:$0xff] %v3962_v52  ;;  %v5456_v58 = vadd.f32 %v3774_v56, %v1828_v30 }
 0x207   : > { %v3965_v59 = vadd.f32 %v5455_v55, %v6994_v44 }
 0x208   : > { %v3964_v60 = vadd.f32 %v5456_v58, %v6994_v44  ;;  %v5411_v61 = vpop.f32.mrb[4].mxu0 }
 0x209   : > { %3997 = vst [vmem:[%s5979_s22 + $0x18] sm:$0xff] %v3965_v59  ;;  %v5457_v62 = vadd.f32 %v5411_v61, %v5161_v31  ;;  %v3784_v63 = vpop.f32.mrb[5].mxu0 }
 0x20a   : > { %3996 = vst [vmem:[%s5979_s22 + $0x10] sm:$0xff] %v3964_v60  ;;  %v5458_v3 = vadd.f32 %v3784_v63, %v1838_v32 }
 0x20b   : > { %v3967_v9 = vadd.f32 %v5457_v62, %v6994_v44 }
 0x20c   : > { %v3966_v47 = vadd.f32 %v5458_v3, %v6994_v44  ;;  %v5414_v49 = vpop.f32.mrb[6].mxu0 }
 0x20d   : > { %3999 = vst [vmem:[%s5979_s22 + $0x28] sm:$0xff] %v3967_v9  ;;  %v5459_v22 = vadd.f32 %v5414_v49, %v5164_v33  ;;  %v3794_v18 = vpop.f32.mrb[7].mxu0 }
 0x20e   : > { %3998 = vst [vmem:[%s5979_s22 + $0x20] sm:$0xff] %v3966_v47  ;;  %v5460_v19 = vadd.f32 %v3794_v18, %v1848_v34 }
 0x20f   : > { %v3969_v0 = vadd.f32 %v5459_v22, %v6994_v44 }
 0x210   : > { %v3968_v1 = vadd.f32 %v5460_v19, %v6994_v44  ;;  %v5417_v4 = vpop.f32.mrb[8].mxu0 }
 0x211   : > { %4001 = vst [vmem:[%s5979_s22 + $0x38] sm:$0xff] %v3969_v0  ;;  %v5461_v6 = vadd.f32 %v5417_v4, %v5167_v35  ;;  %v3804_v8 = vpop.f32.mrb[9].mxu0 }
 0x212   : > { %4000 = vst [vmem:[%s5979_s22 + $0x30] sm:$0xff] %v3968_v1  ;;  %v5462_v11 = vadd.f32 %v3804_v8, %v1858_v36 }
 0x213   : > { %v3971_v14 = vadd.f32 %v5461_v6, %v6994_v44 }
 0x214   : > { %v3970_v15 = vadd.f32 %v5462_v11, %v6994_v44  ;;  %v5420_v17 = vpop.f32.mrb[10].mxu0 }
 0x215   : > { %4003 = vst [vmem:[%s5979_s22 + $0x48] sm:$0xff] %v3971_v14  ;;  %v5463_v28 = vadd.f32 %v5420_v17, %v5170_v38  ;;  %v3814_v2 = vpop.f32.mrb[11].mxu0 }
 0x216   : > { %4002 = vst [vmem:[%s5979_s22 + $0x40] sm:$0xff] %v3970_v15  ;;  %v5464_v7 = vadd.f32 %v3814_v2, %v1868_v39 }
 0x217   : > { %v3973_v12 = vadd.f32 %v5463_v28, %v6994_v44 }
 0x218   : > { %v3972_v57 = vadd.f32 %v5464_v7, %v6994_v44  ;;  %v5423_v53 = vpop.f32.mrb[12].mxu0 }
 0x219   : > { %4005 = vst [vmem:[%s5979_s22 + $0x58] sm:$0xff] %v3973_v12  ;;  %v5465_v51 = vadd.f32 %v5423_v53, %v5173_v40  ;;  %v3824_v5 = vpop.f32.mrb[13].mxu0 }
 0x21a   : > { %4004 = vst [vmem:[%s5979_s22 + $0x50] sm:$0xff] %v3972_v57  ;;  %v5466_v10 = vadd.f32 %v3824_v5, %v1878_v41 }
 0x21b   : > { %v3975_v16 = vadd.f32 %v5465_v51, %v6994_v44 }
 0x21c   : > { %v3974_v20 = vadd.f32 %v5466_v10, %v6994_v44  ;;  %v5426_v21 = vpop.f32.mrb[14].mxu0 }
 0x21d   : > { %4007 = vst [vmem:[%s5979_s22 + $0x68] sm:$0xff] %v3975_v16  ;;  %v5467_v23 = vadd.f32 %v5426_v21, %v5176_v42  ;;  %v3834_v13 = vpop.f32.mrb[15].mxu0 }
 0x21e   : > { %4006 = vst [vmem:[%s5979_s22 + $0x60] sm:$0xff] %v3974_v20  ;;  %v5468_v24 = vadd.f32 %v3834_v13, %v1888_v43 }
 0x21f   : > { %v3977_v25 = vadd.f32 %v5467_v23, %v6994_v44  ;;  %v5229_v26 = vpop.f32.mrb[16].mxu1 }
 0x220   : > { %v3976_v27 = vadd.f32 %v5468_v24, %v6994_v44  ;;  %v5429_v29 = vpop.f32.mrb[16].mxu0  ;;  %v2287_v30 = vpop.f32.mrb[17].mxu1 }
 0x221   : > { %4009 = vst [vmem:[%s5979_s22 + $0x78] sm:$0xff] %v3977_v25  ;;  %v5469_v31 = vadd.f32 %v5429_v29, %v5229_v26  ;;  %v3844_v32 = vpop.f32.mrb[17].mxu0 }
 0x222   : > { %4008 = vst [vmem:[%s5979_s22 + $0x70] sm:$0xff] %v3976_v27  ;;  %v5470_v33 = vadd.f32 %v3844_v32, %v2287_v30 }
 0x223   : > { %v3979_v34 = vadd.f32 %v5469_v31, %v6994_v44  ;;  %v5232_v35 = vpop.f32.mrb[18].mxu1 }
 0x224   : > { %v3978_v36 = vadd.f32 %v5470_v33, %v6994_v44  ;;  %v5432_v38 = vpop.f32.mrb[18].mxu0  ;;  %v2297_v39 = vpop.f32.mrb[19].mxu1 }
 0x225   : > { %4011 = vst [vmem:[%s5979_s22 + $0x88] sm:$0xff] %v3979_v34  ;;  %v5471_v40 = vadd.f32 %v5432_v38, %v5232_v35  ;;  %v3854_v41 = vpop.f32.mrb[19].mxu0 }
 0x226   : > { %4010 = vst [vmem:[%s5979_s22 + $0x80] sm:$0xff] %v3978_v36  ;;  %v5472_v42 = vadd.f32 %v3854_v41, %v2297_v39 }
 0x227   : > { %v3981_v43 = vadd.f32 %v5471_v40, %v6994_v44  ;;  %v5235_v37 = vpop.f32.mrb[20].mxu1 }
 0x228   : > { %v3980_v45 = vadd.f32 %v5472_v42, %v6994_v44  ;;  %v5435_v46 = vpop.f32.mrb[20].mxu0  ;;  %v2307_v48 = vpop.f32.mrb[21].mxu1 }
 0x229   : > { %4013 = vst [vmem:[%s5979_s22 + $0x98] sm:$0xff] %v3981_v43  ;;  %v5473_v50 = vadd.f32 %v5435_v46, %v5235_v37  ;;  %v3864_v52 = vpop.f32.mrb[21].mxu0 }
 0x22a   : > { %4012 = vst [vmem:[%s5979_s22 + $0x90] sm:$0xff] %v3980_v45  ;;  %v5474_v54 = vadd.f32 %v3864_v52, %v2307_v48 }
 0x22b   : > { %v3983_v55 = vadd.f32 %v5473_v50, %v6994_v44  ;;  %v5238_v56 = vpop.f32.mrb[22].mxu1 }
 0x22c   : > { %v3982_v58 = vadd.f32 %v5474_v54, %v6994_v44  ;;  %v5438_v59 = vpop.f32.mrb[22].mxu0  ;;  %v2317_v60 = vpop.f32.mrb[23].mxu1 }
 0x22d   : > { %4015 = vst [vmem:[%s5979_s22 + $0xa8] sm:$0xff] %v3983_v55  ;;  %v5475_v61 = vadd.f32 %v5438_v59, %v5238_v56  ;;  %v3874_v62 = vpop.f32.mrb[23].mxu0 }
 0x22e   : > { %4014 = vst [vmem:[%s5979_s22 + $0xa0] sm:$0xff] %v3982_v58  ;;  %v5476_v63 = vadd.f32 %v3874_v62, %v2317_v60 }
 0x22f   : > { %v3985_v3 = vadd.f32 %v5475_v61, %v6994_v44  ;;  %v5241_v9 = vpop.f32.mrb[24].mxu1 }
 0x230   : > { %v3984_v47 = vadd.f32 %v5476_v63, %v6994_v44  ;;  %v5441_v49 = vpop.f32.mrb[24].mxu0  ;;  %v2327_v22 = vpop.f32.mrb[25].mxu1 }
 0x231   : > { %4017 = vst [vmem:[%s5979_s22 + $0xb8] sm:$0xff] %v3985_v3  ;;  %v5477_v18 = vadd.f32 %v5441_v49, %v5241_v9  ;;  %v3884_v19 = vpop.f32.mrb[25].mxu0 }
 0x232   : > { %4016 = vst [vmem:[%s5979_s22 + $0xb0] sm:$0xff] %v3984_v47  ;;  %v5478_v0 = vadd.f32 %v3884_v19, %v2327_v22 }
 0x233   : > { %v3987_v1 = vadd.f32 %v5477_v18, %v6994_v44  ;;  %v5244_v4 = vpop.f32.mrb[26].mxu1 }
 0x234   : > { %v3986_v6 = vadd.f32 %v5478_v0, %v6994_v44  ;;  %v5444_v8 = vpop.f32.mrb[26].mxu0  ;;  %v2337_v11 = vpop.f32.mrb[27].mxu1 }
 0x235   : > { %4019 = vst [vmem:[%s5979_s22 + $0xc8] sm:$0xff] %v3987_v1  ;;  %v5479_v14 = vadd.f32 %v5444_v8, %v5244_v4  ;;  %v3894_v15 = vpop.f32.mrb[27].mxu0 }
 0x236   : > { %4018 = vst [vmem:[%s5979_s22 + $0xc0] sm:$0xff] %v3986_v6  ;;  %v5480_v17 = vadd.f32 %v3894_v15, %v2337_v11 }
 0x237   : > { %v3989_v28 = vadd.f32 %v5479_v14, %v6994_v44  ;;  %v5247_v2 = vpop.f32.mrb[28].mxu1 }
 0x238   : > { %v3988_v7 = vadd.f32 %v5480_v17, %v6994_v44  ;;  %v5447_v12 = vpop.f32.mrb[28].mxu0  ;;  %v2347_v57 = vpop.f32.mrb[29].mxu1 }
 0x239   : > { %4021 = vst [vmem:[%s5979_s22 + $0xd8] sm:$0xff] %v3989_v28  ;;  %v5481_v53 = vadd.f32 %v5447_v12, %v5247_v2  ;;  %v3904_v51 = vpop.f32.mrb[29].mxu0 }
 0x23a   : > { %4020 = vst [vmem:[%s5979_s22 + $0xd0] sm:$0xff] %v3988_v7  ;;  %v5482_v5 = vadd.f32 %v3904_v51, %v2347_v57 }
 0x23b   : > { %v3991_v10 = vadd.f32 %v5481_v53, %v6994_v44  ;;  %v5250_v16 = vpop.f32.mrb[30].mxu1 }
 0x23c   : > { %v3990_v20 = vadd.f32 %v5482_v5, %v6994_v44  ;;  %v5450_v21 = vpop.f32.mrb[30].mxu0  ;;  %v2357_v23 = vpop.f32.mrb[31].mxu1 }
 0x23d   : > { %4023 = vst [vmem:[%s5979_s22 + $0xe8] sm:$0xff] %v3991_v10  ;;  %v5483_v13 = vadd.f32 %v5450_v21, %v5250_v16  ;;  %v3914_v24 = vpop.f32.mrb[31].mxu0 }
 0x23e   : > { %4022 = vst [vmem:[%s5979_s22 + $0xe0] sm:$0xff] %v3990_v20  ;;  %v5484_v25 = vadd.f32 %v3914_v24, %v2357_v23 }
 0x23f   : > { %v3993_v26 = vadd.f32 %v5483_v13, %v6994_v44 }
 0x240   : > { %v3992_v27 = vadd.f32 %v5484_v25, %v6994_v44 }
 0x241   : > { %4025 = vst [vmem:[%s5979_s22 + $0xf8] sm:$0xff] %v3993_v26 }
 0x242   : > { %4024 = vst [vmem:[%s5979_s22 + $0xf0] sm:$0xff] %v3992_v27 }
 0x243   : > { %5804 = shalt.err (!%p5801_p6)
}
 0x244   : > { %s5805_s15 = scalar_lea.hbm %s7062_s20, 4096  ;;  %s5809_s16 = scalar_lea.hbm %s7124_s7, 8192 }
 0x245   : > { %p5806_p7 = scmp.ne.s32.totalorder %s7062_s20, %s5805_s15  ;;  %p5810_p11 = scmp.lt.u32.totalorder %s7062_s20, %s7124_s7 }
 0x246   : > { %p5811_p12 = scmp.lt.u32.totalorder %s5809_s16, %s5805_s15  ;;  %p5813_p0 = scmp.lt.u32.totalorder %s5805_s15, %s7062_s20 }
 0x247   : > { %p5807_p9 = pnand %p5806_p7, %p5954_p4 }
 0x248   : > { %p5812_p13 = por %p5811_p12, %p5810_p11 }
 0x249   : > { %p5808_p10 = pneg %p5807_p9 }
 0x24a   : > { %p5814_p1 = por %p5813_p0, %p5812_p13 }
 0x24c   : > { %p5815_p2 = pnand %p5814_p1, %p5808_p10 }
 0x24e   : > { %5818 = shalt.err (!%p5815_p2)
}
 0x24f   : > { %s5872_s19 = smov 128   ;;  %s5873_s23 = smov 8  }
 0x250   : > { %5710 = dma.vmem_to_hbm [thread:$0]  (%p5954_p4), %s7064_s17, 4096, %s7062_s20, %s7071_s27, %s5872_s19, %s5872_s19, %s5873_s23  }
 0x251 PF: > { %p5716_p3 = scmp.ge.s32.totalorder %s5869_s29, 2  ;;  %s4056_s30 = sand.u32 1, %s5849_s24  }
 0x252   : > { %s4057_s8 = scalar_lea.sflag [#allocation5], %s4056_s30 }
 0x253   : > { %p5713_p5 = pnand %p5716_p3, %p5961_p8 }
 0x255   : > { %5844 = dma.done.wait (!%p5713_p5), %s4057_s8, 4096  }
 0x256   : > { %5846 = vsyncadd (!%p5713_p5), %s4057_s8, 4294963200  ;;  %s20_s29 = sadd.s32 1, %s5869_s29   ;;  %s7248_s24 = smov %s5853_s25 }
 0x257   : > { %p17_p6 = scmp.ge.s32.totalorder %s20_s29, 4   ;;  %s7249_s25 = smov %s5857_s26 }
 0x258   : > { %s7250_s26 = smov %s5967_s14  ;;  %s7251_s27 = smov %s5865_s28 }
 0x259   : > { %s7252_s28 = smov %s7254_s9  ;;  %19 = sbr.rel (!%p17_p6) target bundleno = 4 (0x4), region = 107 }
 0x260   :  { %4062 = vsyncpa [#allocation5], 1 }
 0x261   :  { %4064 = vsyncpa [#allocation5 + $0x1], 1 }

</bundles_post_ra>
